<compile_context>
chip_gen: v7x
topology: tpu7x:2x2x1
jax: 0.10.0
libtpu: 0.0.40
codegen_flags: <defaults>
</compile_context>

<pallas_src>
import functools
import math

import jax
import jax.numpy as jnp
from jax.experimental import pallas as pl
from jax.experimental.pallas import tpu as pltpu


# ----------------------------------------------------------------------------
# in-kernel helpers
# ----------------------------------------------------------------------------
def _rms_norm(x, w, eps):
    # LlamaRMSNorm: x * rsqrt(mean(x^2) + eps) * weight
    var = jnp.mean(x * x, axis=-1, keepdims=True)
    return x * jax.lax.rsqrt(var + eps) * w.reshape(1, 1, -1)


# ----------------------------------------------------------------------------
# fused LlamaDecoderLayer kernel (one batch tile per grid step)
# ----------------------------------------------------------------------------
def decoder_layer_kernel(x_ref, mask_ref, cos_ref, sin_ref,
                         wq_ref, wk_ref, wv_ref, wo_ref,
                         wg_ref, wu_ref, wd_ref,
                         ln1_ref, ln2_ref,
                         out_ref,
                         *, num_heads, num_kv_heads, head_dim, rms_eps):
    TB, S, H = x_ref.shape
    n_rep = num_heads // num_kv_heads
    scale = 1.0 / math.sqrt(head_dim)

    x = x_ref[...]                                     # (TB, S, H) f32

    # ---- input_layernorm (RMSNorm) ------------------------------------------
    h = _rms_norm(x, ln1_ref[...], rms_eps)
    h2 = h.reshape(TB * S, H).astype(jnp.bfloat16)     # bf16 operand for MXU

    cos = cos_ref[...][None, :, :]                     # (1, S, hd) f32
    sin = sin_ref[...][None, :, :]
    mask = mask_ref[...]                               # (TB, S, S) additive f32

    def rope(t):                                       # t: (TB, S, hd) f32
        t1 = t[..., : head_dim // 2]
        t2 = t[..., head_dim // 2:]
        rot = jnp.concatenate([-t2, t1], axis=-1)
        return t * cos + rot * sin

    # ---- K / V projections per KV head (GQA: shared across n_rep Q heads) ---
    k_heads = []
    v_heads = []
    for g in range(num_kv_heads):
        kg = jnp.dot(h2, wk_ref[g],
                     preferred_element_type=jnp.float32).reshape(TB, S, head_dim)
        vg = jnp.dot(h2, wv_ref[g],
                     preferred_element_type=jnp.float32).reshape(TB, S, head_dim)
        k_heads.append(rope(kg).astype(jnp.bfloat16))
        v_heads.append(vg.astype(jnp.bfloat16))

    # ---- per-head attention, o_proj accumulated on the fly ------------------
    attn_out = jnp.zeros((TB * S, H), jnp.float32)
    for hq in range(num_heads):
        qh = jnp.dot(h2, wq_ref[hq],
                     preferred_element_type=jnp.float32).reshape(TB, S, head_dim)
        qh = rope(qh).astype(jnp.bfloat16)
        kg = k_heads[hq // n_rep]
        vg = v_heads[hq // n_rep]

        s = jnp.einsum("bqd,bkd->bqk", qh, kg,
                       preferred_element_type=jnp.float32) * scale
        s = s + mask                                   # causal / padding mask
        m = jnp.max(s, axis=-1, keepdims=True)
        p = jnp.exp(s - m)
        denom = jnp.sum(p, axis=-1, keepdims=True)
        attn = p * pl.reciprocal(denom, approx=True)   # softmax (EUP recip)

        ctx = jnp.einsum("bqk,bkd->bqd", attn.astype(jnp.bfloat16), vg,
                         preferred_element_type=jnp.float32)
        ctx2 = ctx.reshape(TB * S, head_dim).astype(jnp.bfloat16)
        attn_out = attn_out + jnp.dot(ctx2, wo_ref[hq],
                                      preferred_element_type=jnp.float32)

    h_attn = x + attn_out.reshape(TB, S, H)            # residual add

    # ---- post_attention_layernorm + SwiGLU MLP -------------------------------
    h_norm = _rms_norm(h_attn, ln2_ref[...], rms_eps)
    hf = h_norm.reshape(TB * S, H).astype(jnp.bfloat16)
    g = jnp.dot(hf, wg_ref[...], preferred_element_type=jnp.float32)
    u = jnp.dot(hf, wu_ref[...], preferred_element_type=jnp.float32)
    act = g * (1.0 / (1.0 + jnp.exp(-g)))              # SiLU (exp -> EUP slot)
    mlp_in = (act * u).astype(jnp.bfloat16)
    d = jnp.dot(mlp_in, wd_ref[...], preferred_element_type=jnp.float32)

    out_ref[...] = h_attn + d.reshape(TB, S, H)        # second residual add


# ----------------------------------------------------------------------------
# wrapper: pallas_call with a parallel grid over the batch dimension
# ----------------------------------------------------------------------------
def llama_decoder_layer(hidden_states, attention_mask, cos, sin, params, *,
                        num_heads, num_kv_heads, rms_eps=1e-6, block_b=1):
    B, S, H = hidden_states.shape
    head_dim = H // num_heads
    assert B % block_b == 0

    kernel = functools.partial(
        decoder_layer_kernel,
        num_heads=num_heads, num_kv_heads=num_kv_heads,
        head_dim=head_dim, rms_eps=rms_eps)

    def resident(shape):
        nd = len(shape)
        return pl.BlockSpec(shape, lambda b, _nd=nd: (0,) * _nd)

    in_specs = [
        pl.BlockSpec((block_b, S, H), lambda b: (b, 0, 0)),   # hidden_states
        pl.BlockSpec((block_b, S, S), lambda b: (b, 0, 0)),   # additive mask
        resident(cos.shape),                                   # RoPE cos
        resident(sin.shape),                                   # RoPE sin
        resident(params["wq"].shape),
        resident(params["wk"].shape),
        resident(params["wv"].shape),
        resident(params["wo"].shape),
        resident(params["wg"].shape),
        resident(params["wu"].shape),
        resident(params["wd"].shape),
        resident(params["ln1"].shape),
        resident(params["ln2"].shape),
    ]
    out_specs = pl.BlockSpec((block_b, S, H), lambda b: (b, 0, 0))

    return pl.pallas_call(
        kernel,
        grid=(B // block_b,),
        in_specs=in_specs,
        out_specs=out_specs,
        out_shape=jax.ShapeDtypeStruct((B, S, H), jnp.float32),
        compiler_params=pltpu.CompilerParams(
            dimension_semantics=("parallel",),
            vmem_limit_bytes=32 * 1024 * 1024),
    )(hidden_states, attention_mask, cos, sin,
      params["wq"], params["wk"], params["wv"], params["wo"],
      params["wg"], params["wu"], params["wd"],
      params["ln1"], params["ln2"])


# ----------------------------------------------------------------------------
# parameter re-layout: PyTorch (out, in) Linear weights -> kernel layout
# ----------------------------------------------------------------------------
def prepare_kernel_params(tp, num_heads, num_kv_heads, dtype=jnp.bfloat16):
    H = tp["q"].shape[1]
    hd = H // num_heads
    wq = tp["q"].T.reshape(H, num_heads, hd).transpose(1, 0, 2).astype(dtype)
    wk = tp["k"].T.reshape(H, num_kv_heads, hd).transpose(1, 0, 2).astype(dtype)
    wv = tp["v"].T.reshape(H, num_kv_heads, hd).transpose(1, 0, 2).astype(dtype)
    wo = tp["o"].T.reshape(num_heads, hd, H).astype(dtype)
    wg = tp["gate"].T.astype(dtype)
    wu = tp["up"].T.astype(dtype)
    wd = tp["down"].T.astype(dtype)
    ln1 = tp["ln1"].reshape(1, H).astype(jnp.float32)
    ln2 = tp["ln2"].reshape(1, H).astype(jnp.float32)
    return dict(wq=wq, wk=wk, wv=wv, wo=wo, wg=wg, wu=wu, wd=wd,
                ln1=ln1, ln2=ln2)


# ----------------------------------------------------------------------------
# pure-JAX f32 reference (mirrors the PyTorch LlamaDecoderLayer forward)
# ----------------------------------------------------------------------------
def llama_decoder_layer_reference(x, mask, cos, sin, tp, *,
                                  num_heads, num_kv_heads, rms_eps):
    B, S, H = x.shape
    hd = H // num_heads
    n_rep = num_heads // num_kv_heads

    def rms(v, w):
        var = jnp.mean(v * v, axis=-1, keepdims=True)
        return v * jax.lax.rsqrt(var + rms_eps) * w

    def rope(t):  # (B, nh, S, hd)
        c = cos[None, None]
        s = sin[None, None]
        t1 = t[..., : hd // 2]
        t2 = t[..., hd // 2:]
        return t * c + jnp.concatenate([-t2, t1], axis=-1) * s

    h = rms(x, tp["ln1"])
    q = (h @ tp["q"].T).reshape(B, S, num_heads, hd).transpose(0, 2, 1, 3)
    k = (h @ tp["k"].T).reshape(B, S, num_kv_heads, hd).transpose(0, 2, 1, 3)
    v = (h @ tp["v"].T).reshape(B, S, num_kv_heads, hd).transpose(0, 2, 1, 3)
    q, k = rope(q), rope(k)
    k = jnp.repeat(k, n_rep, axis=1)
    v = jnp.repeat(v, n_rep, axis=1)
    s = (q @ k.transpose(0, 1, 3, 2)) / math.sqrt(hd) + mask[:, None]
    a = jax.nn.softmax(s, axis=-1)
    ctx = (a @ v).transpose(0, 2, 1, 3).reshape(B, S, H)
    h1 = x + ctx @ tp["o"].T
    h2 = rms(h1, tp["ln2"])
    g = h2 @ tp["gate"].T
    u = h2 @ tp["up"].T
    return h1 + (g * jax.nn.sigmoid(g) * u) @ tp["down"].T


# ----------------------------------------------------------------------------
if __name__ == "__main__":
    key = jax.random.PRNGKey(0)

    # Small-but-lane-dense Llama config.
    B, S, H = 2, 16, 128
    NUM_HEADS, NUM_KV_HEADS = 4, 2
    HEAD_DIM = H // NUM_HEADS
    INTERMEDIATE = 256
    RMS_EPS = 1e-6
    ROPE_BASE = 10000.0

    keys = jax.random.split(key, 9)
    x = jax.random.normal(keys[0], (B, S, H), jnp.float32)

    def w(k, shape, scale=0.02):
        return scale * jax.random.normal(k, shape, jnp.float32)

    # Weights in PyTorch nn.Linear (out_features, in_features) layout.
    torch_params = dict(
        q=w(keys[1], (NUM_HEADS * HEAD_DIM, H)),
        k=w(keys[2], (NUM_KV_HEADS * HEAD_DIM, H)),
        v=w(keys[3], (NUM_KV_HEADS * HEAD_DIM, H)),
        o=w(keys[4], (H, NUM_HEADS * HEAD_DIM)),
        gate=w(keys[5], (INTERMEDIATE, H)),
        up=w(keys[6], (INTERMEDIATE, H)),
        down=w(keys[7], (H, INTERMEDIATE)),
        ln1=jnp.ones((H,), jnp.float32),
        ln2=jnp.ones((H,), jnp.float32),
    )

    # RoPE tables for position_ids = arange(S) (precomputed outside the kernel).
    inv_freq = 1.0 / (ROPE_BASE ** (jnp.arange(0, HEAD_DIM, 2, dtype=jnp.float32)
                                    / HEAD_DIM))
    t = jnp.arange(S, dtype=jnp.float32)
    freqs = jnp.einsum("i,j->ij", t, inv_freq)
    emb = jnp.concatenate([freqs, freqs], axis=-1)        # (S, HEAD_DIM)
    cos, sin = jnp.cos(emb), jnp.sin(emb)

    # Additive causal mask (0 = attend, -1e9 = masked), HF-style semantics.
    causal = jnp.where(jnp.arange(S)[:, None] >= jnp.arange(S)[None, :],
                       0.0, -1e9).astype(jnp.float32)
    mask = jnp.broadcast_to(causal, (B, S, S))

    kparams = prepare_kernel_params(torch_params, NUM_HEADS, NUM_KV_HEADS)

    out = llama_decoder_layer(x, mask, cos, sin, kparams,
                              num_heads=NUM_HEADS, num_kv_heads=NUM_KV_HEADS,
                              rms_eps=RMS_EPS, block_b=1)
    jax.block_until_ready(out)
    assert out.shape == (B, S, H)

    ref = llama_decoder_layer_reference(x, mask, cos, sin, torch_params,
                                        num_heads=NUM_HEADS,
                                        num_kv_heads=NUM_KV_HEADS,
                                        rms_eps=RMS_EPS)
    err = float(jnp.max(jnp.abs(out - ref)))
    assert err < 5e-2, f"max abs error vs reference: {err}"

    print("KERNEL_OK")
</pallas_src>

<mosaic_0001>
module attributes {stable_mosaic.version = 11 : i64} {
  func.func @decoder_layer_kernel(%arg0: i32, %arg1: memref<1x16x128xf32, #tpu.memory_space<vmem>>, %arg2: memref<1x16x16xf32, #tpu.memory_space<vmem>>, %arg3: memref<16x32xf32, #tpu.memory_space<vmem>>, %arg4: memref<16x32xf32, #tpu.memory_space<vmem>>, %arg5: memref<4x128x32xbf16, #tpu.memory_space<vmem>>, %arg6: memref<2x128x32xbf16, #tpu.memory_space<vmem>>, %arg7: memref<2x128x32xbf16, #tpu.memory_space<vmem>>, %arg8: memref<4x32x128xbf16, #tpu.memory_space<vmem>>, %arg9: memref<128x256xbf16, #tpu.memory_space<vmem>>, %arg10: memref<128x256xbf16, #tpu.memory_space<vmem>>, %arg11: memref<256x128xbf16, #tpu.memory_space<vmem>>, %arg12: memref<1x128xf32, #tpu.memory_space<vmem>>, %arg13: memref<1x128xf32, #tpu.memory_space<vmem>>, %arg14: memref<1x16x128xf32, #tpu.memory_space<vmem>>) attributes {dimension_semantics = [#tpu.dimension_semantics<parallel>], iteration_bounds = array<i64: 2>, scalar_prefetch = 0 : i64, scratch_operands = 0 : i64, tpu.core_type = #tpu.core_type<tc>, window_params = [{transform_indices = @transform_0, window_bounds = array<i64: 1, 16, 128>}, {transform_indices = @transform_1, window_bounds = array<i64: 1, 16, 16>}, {pipeline_mode = #tpu.pipeline_mode<synchronous>, transform_indices = @transform_2, window_bounds = array<i64: 16, 32>}, {pipeline_mode = #tpu.pipeline_mode<synchronous>, transform_indices = @transform_3, window_bounds = array<i64: 16, 32>}, {pipeline_mode = #tpu.pipeline_mode<synchronous>, transform_indices = @transform_4, window_bounds = array<i64: 4, 128, 32>}, {pipeline_mode = #tpu.pipeline_mode<synchronous>, transform_indices = @transform_5, window_bounds = array<i64: 2, 128, 32>}, {pipeline_mode = #tpu.pipeline_mode<synchronous>, transform_indices = @transform_6, window_bounds = array<i64: 2, 128, 32>}, {pipeline_mode = #tpu.pipeline_mode<synchronous>, transform_indices = @transform_7, window_bounds = array<i64: 4, 32, 128>}, {pipeline_mode = #tpu.pipeline_mode<synchronous>, transform_indices = @transform_8, window_bounds = array<i64: 128, 256>}, {pipeline_mode = #tpu.pipeline_mode<synchronous>, transform_indices = @transform_9, window_bounds = array<i64: 128, 256>}, {pipeline_mode = #tpu.pipeline_mode<synchronous>, transform_indices = @transform_10, window_bounds = array<i64: 256, 128>}, {pipeline_mode = #tpu.pipeline_mode<synchronous>, transform_indices = @transform_11, window_bounds = array<i64: 1, 128>}, {pipeline_mode = #tpu.pipeline_mode<synchronous>, transform_indices = @transform_12, window_bounds = array<i64: 1, 128>}, {transform_indices = @transform_13, window_bounds = array<i64: 1, 16, 128>}]} {
    %c0 = arith.constant 0 : index
    %c0_0 = arith.constant 0 : index
    %c0_1 = arith.constant 0 : index
    %0 = vector.load %arg1[%c0, %c0_0, %c0_1] : memref<1x16x128xf32, #tpu.memory_space<vmem>>, vector<1x16x128xf32>
    %c0_2 = arith.constant 0 : index
    %c0_3 = arith.constant 0 : index
    %1 = vector.load %arg12[%c0_2, %c0_3] : memref<1x128xf32, #tpu.memory_space<vmem>>, vector<1x128xf32>
    %2 = arith.mulf %0, %0 : vector<1x16x128xf32>
    %cst = arith.constant dense<0.000000e+00> : vector<1x16xf32>
    %3 = vector.multi_reduction <add>, %2, %cst [2] : vector<1x16x128xf32> to vector<1x16xf32>
    %4 = vector.shape_cast %3 : vector<1x16xf32> to vector<1x16x1xf32>
    %cst_4 = arith.constant 1.280000e+02 : f32
    %5 = vector.broadcast %cst_4 : f32 to vector<1x16x1xf32>
    %6 = arith.divf %4, %5 : vector<1x16x1xf32>
    %cst_5 = arith.constant 9.99999997E-7 : f32
    %7 = vector.broadcast %cst_5 : f32 to vector<1x16x1xf32>
    %8 = arith.addf %6, %7 : vector<1x16x1xf32>
    %9 = math.rsqrt %8 : vector<1x16x1xf32>
    %10 = vector.broadcast %9 : vector<1x16x1xf32> to vector<1x16x128xf32>
    %11 = arith.mulf %0, %10 : vector<1x16x128xf32>
    %12 = vector.shape_cast %1 : vector<1x128xf32> to vector<1x1x128xf32>
    %13 = vector.broadcast %12 : vector<1x1x128xf32> to vector<1x16x128xf32>
    %14 = arith.mulf %11, %13 : vector<1x16x128xf32>
    %15 = vector.shape_cast %14 : vector<1x16x128xf32> to vector<16x128xf32>
    %16 = arith.truncf %15 : vector<16x128xf32> to vector<16x128xbf16>
    %c0_6 = arith.constant 0 : index
    %c0_7 = arith.constant 0 : index
    %17 = vector.load %arg3[%c0_6, %c0_7] : memref<16x32xf32, #tpu.memory_space<vmem>>, vector<16x32xf32>
    %18 = vector.shape_cast %17 : vector<16x32xf32> to vector<1x16x32xf32>
    %c0_8 = arith.constant 0 : index
    %c0_9 = arith.constant 0 : index
    %19 = vector.load %arg4[%c0_8, %c0_9] : memref<16x32xf32, #tpu.memory_space<vmem>>, vector<16x32xf32>
    %20 = vector.shape_cast %19 : vector<16x32xf32> to vector<1x16x32xf32>
    %c0_10 = arith.constant 0 : index
    %c0_11 = arith.constant 0 : index
    %c0_12 = arith.constant 0 : index
    %21 = vector.load %arg2[%c0_10, %c0_11, %c0_12] : memref<1x16x16xf32, #tpu.memory_space<vmem>>, vector<1x16x16xf32>
    %c0_13 = arith.constant 0 : index
    %c0_14 = arith.constant 0 : index
    %c0_15 = arith.constant 0 : index
    %22 = vector.load %arg6[%c0_13, %c0_14, %c0_15] : memref<2x128x32xbf16, #tpu.memory_space<vmem>>, vector<1x128x32xbf16>
    %23 = vector.shape_cast %22 : vector<1x128x32xbf16> to vector<128x32xbf16>
    %cst_16 = arith.constant dense<0.000000e+00> : vector<16x32xf32>
    %24 = tpu.matmul %16, %23, %cst_16 {dimension_numbers = #tpu.dot_dimension_numbers<[1], [0], [0], [1], [0, 0, 1, 1], [], []>} : vector<16x128xbf16>, vector<128x32xbf16>, vector<16x32xf32> -> vector<16x32xf32>
    %25 = vector.shape_cast %24 : vector<16x32xf32> to vector<1x16x32xf32>
    %c0_17 = arith.constant 0 : index
    %c0_18 = arith.constant 0 : index
    %c0_19 = arith.constant 0 : index
    %26 = vector.load %arg7[%c0_17, %c0_18, %c0_19] : memref<2x128x32xbf16, #tpu.memory_space<vmem>>, vector<1x128x32xbf16>
    %27 = vector.shape_cast %26 : vector<1x128x32xbf16> to vector<128x32xbf16>
    %cst_20 = arith.constant dense<0.000000e+00> : vector<16x32xf32>
    %28 = tpu.matmul %16, %27, %cst_20 {dimension_numbers = #tpu.dot_dimension_numbers<[1], [0], [0], [1], [0, 0, 1, 1], [], []>} : vector<16x128xbf16>, vector<128x32xbf16>, vector<16x32xf32> -> vector<16x32xf32>
    %29 = vector.shape_cast %28 : vector<16x32xf32> to vector<1x16x32xf32>
    %30 = vector.extract_strided_slice %25 {offsets = [0, 0, 0], sizes = [1, 16, 16], strides = [1, 1, 1]} : vector<1x16x32xf32> to vector<1x16x16xf32>
    %31 = vector.extract_strided_slice %25 {offsets = [0, 0, 16], sizes = [1, 16, 16], strides = [1, 1, 1]} : vector<1x16x32xf32> to vector<1x16x16xf32>
    %cst_21 = arith.constant 0.000000e+00 : f32
    %32 = vector.broadcast %cst_21 : f32 to vector<1x16x16xf32>
    %33 = arith.subf %32, %31 : vector<1x16x16xf32>
    %34 = tpu.concatenate %33, %30 in 2 : vector<1x16x16xf32>, vector<1x16x16xf32> -> vector<1x16x32xf32>
    %35 = arith.mulf %25, %18 : vector<1x16x32xf32>
    %36 = arith.mulf %34, %20 : vector<1x16x32xf32>
    %37 = arith.addf %35, %36 : vector<1x16x32xf32>
    %38 = arith.truncf %37 : vector<1x16x32xf32> to vector<1x16x32xbf16>
    %39 = arith.truncf %29 : vector<1x16x32xf32> to vector<1x16x32xbf16>
    %c1 = arith.constant 1 : index
    %c0_22 = arith.constant 0 : index
    %c0_23 = arith.constant 0 : index
    %40 = vector.load %arg6[%c1, %c0_22, %c0_23] : memref<2x128x32xbf16, #tpu.memory_space<vmem>>, vector<1x128x32xbf16>
    %41 = vector.shape_cast %40 : vector<1x128x32xbf16> to vector<128x32xbf16>
    %cst_24 = arith.constant dense<0.000000e+00> : vector<16x32xf32>
    %42 = tpu.matmul %16, %41, %cst_24 {dimension_numbers = #tpu.dot_dimension_numbers<[1], [0], [0], [1], [0, 0, 1, 1], [], []>} : vector<16x128xbf16>, vector<128x32xbf16>, vector<16x32xf32> -> vector<16x32xf32>
    %43 = vector.shape_cast %42 : vector<16x32xf32> to vector<1x16x32xf32>
    %c1_25 = arith.constant 1 : index
    %c0_26 = arith.constant 0 : index
    %c0_27 = arith.constant 0 : index
    %44 = vector.load %arg7[%c1_25, %c0_26, %c0_27] : memref<2x128x32xbf16, #tpu.memory_space<vmem>>, vector<1x128x32xbf16>
    %45 = vector.shape_cast %44 : vector<1x128x32xbf16> to vector<128x32xbf16>
    %cst_28 = arith.constant dense<0.000000e+00> : vector<16x32xf32>
    %46 = tpu.matmul %16, %45, %cst_28 {dimension_numbers = #tpu.dot_dimension_numbers<[1], [0], [0], [1], [0, 0, 1, 1], [], []>} : vector<16x128xbf16>, vector<128x32xbf16>, vector<16x32xf32> -> vector<16x32xf32>
    %47 = vector.shape_cast %46 : vector<16x32xf32> to vector<1x16x32xf32>
    %48 = vector.extract_strided_slice %43 {offsets = [0, 0, 0], sizes = [1, 16, 16], strides = [1, 1, 1]} : vector<1x16x32xf32> to vector<1x16x16xf32>
    %49 = vector.extract_strided_slice %43 {offsets = [0, 0, 16], sizes = [1, 16, 16], strides = [1, 1, 1]} : vector<1x16x32xf32> to vector<1x16x16xf32>
    %cst_29 = arith.constant 0.000000e+00 : f32
    %50 = vector.broadcast %cst_29 : f32 to vector<1x16x16xf32>
    %51 = arith.subf %50, %49 : vector<1x16x16xf32>
    %52 = tpu.concatenate %51, %48 in 2 : vector<1x16x16xf32>, vector<1x16x16xf32> -> vector<1x16x32xf32>
    %53 = arith.mulf %43, %18 : vector<1x16x32xf32>
    %54 = arith.mulf %52, %20 : vector<1x16x32xf32>
    %55 = arith.addf %53, %54 : vector<1x16x32xf32>
    %56 = arith.truncf %55 : vector<1x16x32xf32> to vector<1x16x32xbf16>
    %57 = arith.truncf %47 : vector<1x16x32xf32> to vector<1x16x32xbf16>
    %cst_30 = arith.constant 0.000000e+00 : f32
    %58 = vector.broadcast %cst_30 : f32 to vector<16x128xf32>
    %c0_31 = arith.constant 0 : index
    %c0_32 = arith.constant 0 : index
    %c0_33 = arith.constant 0 : index
    %59 = vector.load %arg5[%c0_31, %c0_32, %c0_33] : memref<4x128x32xbf16, #tpu.memory_space<vmem>>, vector<1x128x32xbf16>
    %60 = vector.shape_cast %59 : vector<1x128x32xbf16> to vector<128x32xbf16>
    %cst_34 = arith.constant dense<0.000000e+00> : vector<16x32xf32>
    %61 = tpu.matmul %16, %60, %cst_34 {dimension_numbers = #tpu.dot_dimension_numbers<[1], [0], [0], [1], [0, 0, 1, 1], [], []>} : vector<16x128xbf16>, vector<128x32xbf16>, vector<16x32xf32> -> vector<16x32xf32>
    %62 = vector.shape_cast %61 : vector<16x32xf32> to vector<1x16x32xf32>
    %63 = vector.extract_strided_slice %62 {offsets = [0, 0, 0], sizes = [1, 16, 16], strides = [1, 1, 1]} : vector<1x16x32xf32> to vector<1x16x16xf32>
    %64 = vector.extract_strided_slice %62 {offsets = [0, 0, 16], sizes = [1, 16, 16], strides = [1, 1, 1]} : vector<1x16x32xf32> to vector<1x16x16xf32>
    %cst_35 = arith.constant 0.000000e+00 : f32
    %65 = vector.broadcast %cst_35 : f32 to vector<1x16x16xf32>
    %66 = arith.subf %65, %64 : vector<1x16x16xf32>
    %67 = tpu.concatenate %66, %63 in 2 : vector<1x16x16xf32>, vector<1x16x16xf32> -> vector<1x16x32xf32>
    %68 = arith.mulf %62, %18 : vector<1x16x32xf32>
    %69 = arith.mulf %67, %20 : vector<1x16x32xf32>
    %70 = arith.addf %68, %69 : vector<1x16x32xf32>
    %71 = arith.truncf %70 : vector<1x16x32xf32> to vector<1x16x32xbf16>
    "tpu.trace_start"() <{level = 10 : i32, message = "bqd,bkd->bqk"}> : () -> ()
    %cst_36 = arith.constant dense<0.000000e+00> : vector<1x16x16xf32>
    %72 = tpu.matmul %71, %38, %cst_36 {dimension_numbers = #tpu.dot_dimension_numbers<[2], [2], [1], [1], [0, 0, 0, 1, 1, 1], [0], [0]>} : vector<1x16x32xbf16>, vector<1x16x32xbf16>, vector<1x16x16xf32> -> vector<1x16x16xf32>
    "tpu.trace_stop"() : () -> ()
    %cst_37 = arith.constant 0.176776692 : f32
    %73 = vector.broadcast %cst_37 : f32 to vector<1x16x16xf32>
    %74 = arith.mulf %72, %73 : vector<1x16x16xf32>
    %75 = arith.addf %74, %21 : vector<1x16x16xf32>
    %cst_38 = arith.constant dense<0xFF800000> : vector<1x16xf32>
    %76 = vector.multi_reduction <maximumf>, %75, %cst_38 [2] : vector<1x16x16xf32> to vector<1x16xf32>
    %77 = vector.shape_cast %76 : vector<1x16xf32> to vector<1x16x1xf32>
    %78 = vector.broadcast %77 : vector<1x16x1xf32> to vector<1x16x16xf32>
    %79 = arith.subf %75, %78 : vector<1x16x16xf32>
    %80 = math.exp %79 : vector<1x16x16xf32>
    %cst_39 = arith.constant dense<0.000000e+00> : vector<1x16xf32>
    %81 = vector.multi_reduction <add>, %80, %cst_39 [2] : vector<1x16x16xf32> to vector<1x16xf32>
    %82 = vector.shape_cast %81 : vector<1x16xf32> to vector<1x16x1xf32>
    %83 = tpu.reciprocal %82 {approx = true} : vector<1x16x1xf32> -> vector<1x16x1xf32>
    %84 = vector.broadcast %83 : vector<1x16x1xf32> to vector<1x16x16xf32>
    %85 = arith.mulf %80, %84 : vector<1x16x16xf32>
    %86 = arith.truncf %85 : vector<1x16x16xf32> to vector<1x16x16xbf16>
    "tpu.trace_start"() <{level = 10 : i32, message = "bqk,bkd->bqd"}> : () -> ()
    %cst_40 = arith.constant dense<0.000000e+00> : vector<1x16x32xf32>
    %87 = tpu.matmul %86, %39, %cst_40 {dimension_numbers = #tpu.dot_dimension_numbers<[2], [1], [1], [2], [0, 0, 0, 1, 1, 2], [0], [0]>} : vector<1x16x16xbf16>, vector<1x16x32xbf16>, vector<1x16x32xf32> -> vector<1x16x32xf32>
    "tpu.trace_stop"() : () -> ()
    %88 = vector.shape_cast %87 : vector<1x16x32xf32> to vector<16x32xf32>
    %89 = arith.truncf %88 : vector<16x32xf32> to vector<16x32xbf16>
    %c0_41 = arith.constant 0 : index
    %c0_42 = arith.constant 0 : index
    %c0_43 = arith.constant 0 : index
    %90 = vector.load %arg8[%c0_41, %c0_42, %c0_43] : memref<4x32x128xbf16, #tpu.memory_space<vmem>>, vector<1x32x128xbf16>
    %91 = vector.shape_cast %90 : vector<1x32x128xbf16> to vector<32x128xbf16>
    %cst_44 = arith.constant dense<0.000000e+00> : vector<16x128xf32>
    %92 = tpu.matmul %89, %91, %cst_44 {dimension_numbers = #tpu.dot_dimension_numbers<[1], [0], [0], [1], [0, 0, 1, 1], [], []>} : vector<16x32xbf16>, vector<32x128xbf16>, vector<16x128xf32> -> vector<16x128xf32>
    %93 = arith.addf %58, %92 : vector<16x128xf32>
    %c1_45 = arith.constant 1 : index
    %c0_46 = arith.constant 0 : index
    %c0_47 = arith.constant 0 : index
    %94 = vector.load %arg5[%c1_45, %c0_46, %c0_47] : memref<4x128x32xbf16, #tpu.memory_space<vmem>>, vector<1x128x32xbf16>
    %95 = vector.shape_cast %94 : vector<1x128x32xbf16> to vector<128x32xbf16>
    %cst_48 = arith.constant dense<0.000000e+00> : vector<16x32xf32>
    %96 = tpu.matmul %16, %95, %cst_48 {dimension_numbers = #tpu.dot_dimension_numbers<[1], [0], [0], [1], [0, 0, 1, 1], [], []>} : vector<16x128xbf16>, vector<128x32xbf16>, vector<16x32xf32> -> vector<16x32xf32>
    %97 = vector.shape_cast %96 : vector<16x32xf32> to vector<1x16x32xf32>
    %98 = vector.extract_strided_slice %97 {offsets = [0, 0, 0], sizes = [1, 16, 16], strides = [1, 1, 1]} : vector<1x16x32xf32> to vector<1x16x16xf32>
    %99 = vector.extract_strided_slice %97 {offsets = [0, 0, 16], sizes = [1, 16, 16], strides = [1, 1, 1]} : vector<1x16x32xf32> to vector<1x16x16xf32>
    %cst_49 = arith.constant 0.000000e+00 : f32
    %100 = vector.broadcast %cst_49 : f32 to vector<1x16x16xf32>
    %101 = arith.subf %100, %99 : vector<1x16x16xf32>
    %102 = tpu.concatenate %101, %98 in 2 : vector<1x16x16xf32>, vector<1x16x16xf32> -> vector<1x16x32xf32>
    %103 = arith.mulf %97, %18 : vector<1x16x32xf32>
    %104 = arith.mulf %102, %20 : vector<1x16x32xf32>
    %105 = arith.addf %103, %104 : vector<1x16x32xf32>
    %106 = arith.truncf %105 : vector<1x16x32xf32> to vector<1x16x32xbf16>
    "tpu.trace_start"() <{level = 10 : i32, message = "bqd,bkd->bqk"}> : () -> ()
    %cst_50 = arith.constant dense<0.000000e+00> : vector<1x16x16xf32>
    %107 = tpu.matmul %106, %38, %cst_50 {dimension_numbers = #tpu.dot_dimension_numbers<[2], [2], [1], [1], [0, 0, 0, 1, 1, 1], [0], [0]>} : vector<1x16x32xbf16>, vector<1x16x32xbf16>, vector<1x16x16xf32> -> vector<1x16x16xf32>
    "tpu.trace_stop"() : () -> ()
    %cst_51 = arith.constant 0.176776692 : f32
    %108 = vector.broadcast %cst_51 : f32 to vector<1x16x16xf32>
    %109 = arith.mulf %107, %108 : vector<1x16x16xf32>
    %110 = arith.addf %109, %21 : vector<1x16x16xf32>
    %cst_52 = arith.constant dense<0xFF800000> : vector<1x16xf32>
    %111 = vector.multi_reduction <maximumf>, %110, %cst_52 [2] : vector<1x16x16xf32> to vector<1x16xf32>
    %112 = vector.shape_cast %111 : vector<1x16xf32> to vector<1x16x1xf32>
    %113 = vector.broadcast %112 : vector<1x16x1xf32> to vector<1x16x16xf32>
    %114 = arith.subf %110, %113 : vector<1x16x16xf32>
    %115 = math.exp %114 : vector<1x16x16xf32>
    %cst_53 = arith.constant dense<0.000000e+00> : vector<1x16xf32>
    %116 = vector.multi_reduction <add>, %115, %cst_53 [2] : vector<1x16x16xf32> to vector<1x16xf32>
    %117 = vector.shape_cast %116 : vector<1x16xf32> to vector<1x16x1xf32>
    %118 = tpu.reciprocal %117 {approx = true} : vector<1x16x1xf32> -> vector<1x16x1xf32>
    %119 = vector.broadcast %118 : vector<1x16x1xf32> to vector<1x16x16xf32>
    %120 = arith.mulf %115, %119 : vector<1x16x16xf32>
    %121 = arith.truncf %120 : vector<1x16x16xf32> to vector<1x16x16xbf16>
    "tpu.trace_start"() <{level = 10 : i32, message = "bqk,bkd->bqd"}> : () -> ()
    %cst_54 = arith.constant dense<0.000000e+00> : vector<1x16x32xf32>
    %122 = tpu.matmul %121, %39, %cst_54 {dimension_numbers = #tpu.dot_dimension_numbers<[2], [1], [1], [2], [0, 0, 0, 1, 1, 2], [0], [0]>} : vector<1x16x16xbf16>, vector<1x16x32xbf16>, vector<1x16x32xf32> -> vector<1x16x32xf32>
    "tpu.trace_stop"() : () -> ()
    %123 = vector.shape_cast %122 : vector<1x16x32xf32> to vector<16x32xf32>
    %124 = arith.truncf %123 : vector<16x32xf32> to vector<16x32xbf16>
    %c1_55 = arith.constant 1 : index
    %c0_56 = arith.constant 0 : index
    %c0_57 = arith.constant 0 : index
    %125 = vector.load %arg8[%c1_55, %c0_56, %c0_57] : memref<4x32x128xbf16, #tpu.memory_space<vmem>>, vector<1x32x128xbf16>
    %126 = vector.shape_cast %125 : vector<1x32x128xbf16> to vector<32x128xbf16>
    %cst_58 = arith.constant dense<0.000000e+00> : vector<16x128xf32>
    %127 = tpu.matmul %124, %126, %cst_58 {dimension_numbers = #tpu.dot_dimension_numbers<[1], [0], [0], [1], [0, 0, 1, 1], [], []>} : vector<16x32xbf16>, vector<32x128xbf16>, vector<16x128xf32> -> vector<16x128xf32>
    %128 = arith.addf %93, %127 : vector<16x128xf32>
    %c2 = arith.constant 2 : index
    %c0_59 = arith.constant 0 : index
    %c0_60 = arith.constant 0 : index
    %129 = vector.load %arg5[%c2, %c0_59, %c0_60] : memref<4x128x32xbf16, #tpu.memory_space<vmem>>, vector<1x128x32xbf16>
    %130 = vector.shape_cast %129 : vector<1x128x32xbf16> to vector<128x32xbf16>
    %cst_61 = arith.constant dense<0.000000e+00> : vector<16x32xf32>
    %131 = tpu.matmul %16, %130, %cst_61 {dimension_numbers = #tpu.dot_dimension_numbers<[1], [0], [0], [1], [0, 0, 1, 1], [], []>} : vector<16x128xbf16>, vector<128x32xbf16>, vector<16x32xf32> -> vector<16x32xf32>
    %132 = vector.shape_cast %131 : vector<16x32xf32> to vector<1x16x32xf32>
    %133 = vector.extract_strided_slice %132 {offsets = [0, 0, 0], sizes = [1, 16, 16], strides = [1, 1, 1]} : vector<1x16x32xf32> to vector<1x16x16xf32>
    %134 = vector.extract_strided_slice %132 {offsets = [0, 0, 16], sizes = [1, 16, 16], strides = [1, 1, 1]} : vector<1x16x32xf32> to vector<1x16x16xf32>
    %cst_62 = arith.constant 0.000000e+00 : f32
    %135 = vector.broadcast %cst_62 : f32 to vector<1x16x16xf32>
    %136 = arith.subf %135, %134 : vector<1x16x16xf32>
    %137 = tpu.concatenate %136, %133 in 2 : vector<1x16x16xf32>, vector<1x16x16xf32> -> vector<1x16x32xf32>
    %138 = arith.mulf %132, %18 : vector<1x16x32xf32>
    %139 = arith.mulf %137, %20 : vector<1x16x32xf32>
    %140 = arith.addf %138, %139 : vector<1x16x32xf32>
    %141 = arith.truncf %140 : vector<1x16x32xf32> to vector<1x16x32xbf16>
    "tpu.trace_start"() <{level = 10 : i32, message = "bqd,bkd->bqk"}> : () -> ()
    %cst_63 = arith.constant dense<0.000000e+00> : vector<1x16x16xf32>
    %142 = tpu.matmul %141, %56, %cst_63 {dimension_numbers = #tpu.dot_dimension_numbers<[2], [2], [1], [1], [0, 0, 0, 1, 1, 1], [0], [0]>} : vector<1x16x32xbf16>, vector<1x16x32xbf16>, vector<1x16x16xf32> -> vector<1x16x16xf32>
    "tpu.trace_stop"() : () -> ()
    %cst_64 = arith.constant 0.176776692 : f32
    %143 = vector.broadcast %cst_64 : f32 to vector<1x16x16xf32>
    %144 = arith.mulf %142, %143 : vector<1x16x16xf32>
    %145 = arith.addf %144, %21 : vector<1x16x16xf32>
    %cst_65 = arith.constant dense<0xFF800000> : vector<1x16xf32>
    %146 = vector.multi_reduction <maximumf>, %145, %cst_65 [2] : vector<1x16x16xf32> to vector<1x16xf32>
    %147 = vector.shape_cast %146 : vector<1x16xf32> to vector<1x16x1xf32>
    %148 = vector.broadcast %147 : vector<1x16x1xf32> to vector<1x16x16xf32>
    %149 = arith.subf %145, %148 : vector<1x16x16xf32>
    %150 = math.exp %149 : vector<1x16x16xf32>
    %cst_66 = arith.constant dense<0.000000e+00> : vector<1x16xf32>
    %151 = vector.multi_reduction <add>, %150, %cst_66 [2] : vector<1x16x16xf32> to vector<1x16xf32>
    %152 = vector.shape_cast %151 : vector<1x16xf32> to vector<1x16x1xf32>
    %153 = tpu.reciprocal %152 {approx = true} : vector<1x16x1xf32> -> vector<1x16x1xf32>
    %154 = vector.broadcast %153 : vector<1x16x1xf32> to vector<1x16x16xf32>
    %155 = arith.mulf %150, %154 : vector<1x16x16xf32>
    %156 = arith.truncf %155 : vector<1x16x16xf32> to vector<1x16x16xbf16>
    "tpu.trace_start"() <{level = 10 : i32, message = "bqk,bkd->bqd"}> : () -> ()
    %cst_67 = arith.constant dense<0.000000e+00> : vector<1x16x32xf32>
    %157 = tpu.matmul %156, %57, %cst_67 {dimension_numbers = #tpu.dot_dimension_numbers<[2], [1], [1], [2], [0, 0, 0, 1, 1, 2], [0], [0]>} : vector<1x16x16xbf16>, vector<1x16x32xbf16>, vector<1x16x32xf32> -> vector<1x16x32xf32>
    "tpu.trace_stop"() : () -> ()
    %158 = vector.shape_cast %157 : vector<1x16x32xf32> to vector<16x32xf32>
    %159 = arith.truncf %158 : vector<16x32xf32> to vector<16x32xbf16>
    %c2_68 = arith.constant 2 : index
    %c0_69 = arith.constant 0 : index
    %c0_70 = arith.constant 0 : index
    %160 = vector.load %arg8[%c2_68, %c0_69, %c0_70] : memref<4x32x128xbf16, #tpu.memory_space<vmem>>, vector<1x32x128xbf16>
    %161 = vector.shape_cast %160 : vector<1x32x128xbf16> to vector<32x128xbf16>
    %cst_71 = arith.constant dense<0.000000e+00> : vector<16x128xf32>
    %162 = tpu.matmul %159, %161, %cst_71 {dimension_numbers = #tpu.dot_dimension_numbers<[1], [0], [0], [1], [0, 0, 1, 1], [], []>} : vector<16x32xbf16>, vector<32x128xbf16>, vector<16x128xf32> -> vector<16x128xf32>
    %163 = arith.addf %128, %162 : vector<16x128xf32>
    %c3 = arith.constant 3 : index
    %c0_72 = arith.constant 0 : index
    %c0_73 = arith.constant 0 : index
    %164 = vector.load %arg5[%c3, %c0_72, %c0_73] : memref<4x128x32xbf16, #tpu.memory_space<vmem>>, vector<1x128x32xbf16>
    %165 = vector.shape_cast %164 : vector<1x128x32xbf16> to vector<128x32xbf16>
    %cst_74 = arith.constant dense<0.000000e+00> : vector<16x32xf32>
    %166 = tpu.matmul %16, %165, %cst_74 {dimension_numbers = #tpu.dot_dimension_numbers<[1], [0], [0], [1], [0, 0, 1, 1], [], []>} : vector<16x128xbf16>, vector<128x32xbf16>, vector<16x32xf32> -> vector<16x32xf32>
    %167 = vector.shape_cast %166 : vector<16x32xf32> to vector<1x16x32xf32>
    %168 = vector.extract_strided_slice %167 {offsets = [0, 0, 0], sizes = [1, 16, 16], strides = [1, 1, 1]} : vector<1x16x32xf32> to vector<1x16x16xf32>
    %169 = vector.extract_strided_slice %167 {offsets = [0, 0, 16], sizes = [1, 16, 16], strides = [1, 1, 1]} : vector<1x16x32xf32> to vector<1x16x16xf32>
    %cst_75 = arith.constant 0.000000e+00 : f32
    %170 = vector.broadcast %cst_75 : f32 to vector<1x16x16xf32>
    %171 = arith.subf %170, %169 : vector<1x16x16xf32>
    %172 = tpu.concatenate %171, %168 in 2 : vector<1x16x16xf32>, vector<1x16x16xf32> -> vector<1x16x32xf32>
    %173 = arith.mulf %167, %18 : vector<1x16x32xf32>
    %174 = arith.mulf %172, %20 : vector<1x16x32xf32>
    %175 = arith.addf %173, %174 : vector<1x16x32xf32>
    %176 = arith.truncf %175 : vector<1x16x32xf32> to vector<1x16x32xbf16>
    "tpu.trace_start"() <{level = 10 : i32, message = "bqd,bkd->bqk"}> : () -> ()
    %cst_76 = arith.constant dense<0.000000e+00> : vector<1x16x16xf32>
    %177 = tpu.matmul %176, %56, %cst_76 {dimension_numbers = #tpu.dot_dimension_numbers<[2], [2], [1], [1], [0, 0, 0, 1, 1, 1], [0], [0]>} : vector<1x16x32xbf16>, vector<1x16x32xbf16>, vector<1x16x16xf32> -> vector<1x16x16xf32>
    "tpu.trace_stop"() : () -> ()
    %cst_77 = arith.constant 0.176776692 : f32
    %178 = vector.broadcast %cst_77 : f32 to vector<1x16x16xf32>
    %179 = arith.mulf %177, %178 : vector<1x16x16xf32>
    %180 = arith.addf %179, %21 : vector<1x16x16xf32>
    %cst_78 = arith.constant dense<0xFF800000> : vector<1x16xf32>
    %181 = vector.multi_reduction <maximumf>, %180, %cst_78 [2] : vector<1x16x16xf32> to vector<1x16xf32>
    %182 = vector.shape_cast %181 : vector<1x16xf32> to vector<1x16x1xf32>
    %183 = vector.broadcast %182 : vector<1x16x1xf32> to vector<1x16x16xf32>
    %184 = arith.subf %180, %183 : vector<1x16x16xf32>
    %185 = math.exp %184 : vector<1x16x16xf32>
    %cst_79 = arith.constant dense<0.000000e+00> : vector<1x16xf32>
    %186 = vector.multi_reduction <add>, %185, %cst_79 [2] : vector<1x16x16xf32> to vector<1x16xf32>
    %187 = vector.shape_cast %186 : vector<1x16xf32> to vector<1x16x1xf32>
    %188 = tpu.reciprocal %187 {approx = true} : vector<1x16x1xf32> -> vector<1x16x1xf32>
    %189 = vector.broadcast %188 : vector<1x16x1xf32> to vector<1x16x16xf32>
    %190 = arith.mulf %185, %189 : vector<1x16x16xf32>
    %191 = arith.truncf %190 : vector<1x16x16xf32> to vector<1x16x16xbf16>
    "tpu.trace_start"() <{level = 10 : i32, message = "bqk,bkd->bqd"}> : () -> ()
    %cst_80 = arith.constant dense<0.000000e+00> : vector<1x16x32xf32>
    %192 = tpu.matmul %191, %57, %cst_80 {dimension_numbers = #tpu.dot_dimension_numbers<[2], [1], [1], [2], [0, 0, 0, 1, 1, 2], [0], [0]>} : vector<1x16x16xbf16>, vector<1x16x32xbf16>, vector<1x16x32xf32> -> vector<1x16x32xf32>
    "tpu.trace_stop"() : () -> ()
    %193 = vector.shape_cast %192 : vector<1x16x32xf32> to vector<16x32xf32>
    %194 = arith.truncf %193 : vector<16x32xf32> to vector<16x32xbf16>
    %c3_81 = arith.constant 3 : index
    %c0_82 = arith.constant 0 : index
    %c0_83 = arith.constant 0 : index
    %195 = vector.load %arg8[%c3_81, %c0_82, %c0_83] : memref<4x32x128xbf16, #tpu.memory_space<vmem>>, vector<1x32x128xbf16>
    %196 = vector.shape_cast %195 : vector<1x32x128xbf16> to vector<32x128xbf16>
    %cst_84 = arith.constant dense<0.000000e+00> : vector<16x128xf32>
    %197 = tpu.matmul %194, %196, %cst_84 {dimension_numbers = #tpu.dot_dimension_numbers<[1], [0], [0], [1], [0, 0, 1, 1], [], []>} : vector<16x32xbf16>, vector<32x128xbf16>, vector<16x128xf32> -> vector<16x128xf32>
    %198 = arith.addf %163, %197 : vector<16x128xf32>
    %199 = vector.shape_cast %198 : vector<16x128xf32> to vector<1x16x128xf32>
    %200 = arith.addf %0, %199 : vector<1x16x128xf32>
    %c0_85 = arith.constant 0 : index
    %c0_86 = arith.constant 0 : index
    %201 = vector.load %arg13[%c0_85, %c0_86] : memref<1x128xf32, #tpu.memory_space<vmem>>, vector<1x128xf32>
    %202 = arith.mulf %200, %200 : vector<1x16x128xf32>
    %cst_87 = arith.constant dense<0.000000e+00> : vector<1x16xf32>
    %203 = vector.multi_reduction <add>, %202, %cst_87 [2] : vector<1x16x128xf32> to vector<1x16xf32>
    %204 = vector.shape_cast %203 : vector<1x16xf32> to vector<1x16x1xf32>
    %cst_88 = arith.constant 1.280000e+02 : f32
    %205 = vector.broadcast %cst_88 : f32 to vector<1x16x1xf32>
    %206 = arith.divf %204, %205 : vector<1x16x1xf32>
    %cst_89 = arith.constant 9.99999997E-7 : f32
    %207 = vector.broadcast %cst_89 : f32 to vector<1x16x1xf32>
    %208 = arith.addf %206, %207 : vector<1x16x1xf32>
    %209 = math.rsqrt %208 : vector<1x16x1xf32>
    %210 = vector.broadcast %209 : vector<1x16x1xf32> to vector<1x16x128xf32>
    %211 = arith.mulf %200, %210 : vector<1x16x128xf32>
    %212 = vector.shape_cast %201 : vector<1x128xf32> to vector<1x1x128xf32>
    %213 = vector.broadcast %212 : vector<1x1x128xf32> to vector<1x16x128xf32>
    %214 = arith.mulf %211, %213 : vector<1x16x128xf32>
    %215 = vector.shape_cast %214 : vector<1x16x128xf32> to vector<16x128xf32>
    %216 = arith.truncf %215 : vector<16x128xf32> to vector<16x128xbf16>
    %c0_90 = arith.constant 0 : index
    %c0_91 = arith.constant 0 : index
    %217 = vector.load %arg9[%c0_90, %c0_91] : memref<128x256xbf16, #tpu.memory_space<vmem>>, vector<128x256xbf16>
    %cst_92 = arith.constant dense<0.000000e+00> : vector<16x256xf32>
    %218 = tpu.matmul %216, %217, %cst_92 {dimension_numbers = #tpu.dot_dimension_numbers<[1], [0], [0], [1], [0, 0, 1, 1], [], []>} : vector<16x128xbf16>, vector<128x256xbf16>, vector<16x256xf32> -> vector<16x256xf32>
    %c0_93 = arith.constant 0 : index
    %c0_94 = arith.constant 0 : index
    %219 = vector.load %arg10[%c0_93, %c0_94] : memref<128x256xbf16, #tpu.memory_space<vmem>>, vector<128x256xbf16>
    %cst_95 = arith.constant dense<0.000000e+00> : vector<16x256xf32>
    %220 = tpu.matmul %216, %219, %cst_95 {dimension_numbers = #tpu.dot_dimension_numbers<[1], [0], [0], [1], [0, 0, 1, 1], [], []>} : vector<16x128xbf16>, vector<128x256xbf16>, vector<16x256xf32> -> vector<16x256xf32>
    %cst_96 = arith.constant 0.000000e+00 : f32
    %221 = vector.broadcast %cst_96 : f32 to vector<16x256xf32>
    %222 = arith.subf %221, %218 : vector<16x256xf32>
    %223 = math.exp %222 : vector<16x256xf32>
    %cst_97 = arith.constant 1.000000e+00 : f32
    %224 = vector.broadcast %cst_97 : f32 to vector<16x256xf32>
    %225 = arith.addf %224, %223 : vector<16x256xf32>
    %cst_98 = arith.constant 1.000000e+00 : f32
    %226 = vector.broadcast %cst_98 : f32 to vector<16x256xf32>
    %227 = arith.divf %226, %225 : vector<16x256xf32>
    %228 = arith.mulf %218, %227 : vector<16x256xf32>
    %229 = arith.mulf %228, %220 : vector<16x256xf32>
    %230 = arith.truncf %229 : vector<16x256xf32> to vector<16x256xbf16>
    %c0_99 = arith.constant 0 : index
    %c0_100 = arith.constant 0 : index
    %231 = vector.load %arg11[%c0_99, %c0_100] : memref<256x128xbf16, #tpu.memory_space<vmem>>, vector<256x128xbf16>
    %cst_101 = arith.constant dense<0.000000e+00> : vector<16x128xf32>
    %232 = tpu.matmul %230, %231, %cst_101 {dimension_numbers = #tpu.dot_dimension_numbers<[1], [0], [0], [1], [0, 0, 1, 1], [], []>} : vector<16x256xbf16>, vector<256x128xbf16>, vector<16x128xf32> -> vector<16x128xf32>
    %233 = vector.shape_cast %232 : vector<16x128xf32> to vector<1x16x128xf32>
    %234 = arith.addf %200, %233 : vector<1x16x128xf32>
    %c0_102 = arith.constant 0 : index
    %c0_103 = arith.constant 0 : index
    %c0_104 = arith.constant 0 : index
    %235 = vector.load %arg14[%c0_102, %c0_103, %c0_104] : memref<1x16x128xf32, #tpu.memory_space<vmem>>, vector<1x16x128xf32>
    tpu.vector_store %arg14[%c0_102, %c0_103, %c0_104], %234 {strides = array<i32>} : memref<1x16x128xf32, #tpu.memory_space<vmem>>, vector<1x16x128xf32>,
    return
  }
  func.func @transform_0(%arg0: i32) -> (i32, i32, i32) {
    %c0_i32 = arith.constant 0 : i32
    %c0_i32_0 = arith.constant 0 : i32
    %c0_i32_1 = arith.constant 0 : i32
    return %arg0, %c0_i32, %c0_i32_0 : i32, i32, i32
  }
  func.func @transform_1(%arg0: i32) -> (i32, i32, i32) {
    %c0_i32 = arith.constant 0 : i32
    %c0_i32_0 = arith.constant 0 : i32
    %c0_i32_1 = arith.constant 0 : i32
    return %arg0, %c0_i32, %c0_i32_0 : i32, i32, i32
  }
  func.func @transform_2(%arg0: i32) -> (i32, i32) {
    %c0_i32 = arith.constant 0 : i32
    %c0_i32_0 = arith.constant 0 : i32
    %c0_i32_1 = arith.constant 0 : i32
    return %c0_i32, %c0_i32_0 : i32, i32
  }
  func.func @transform_3(%arg0: i32) -> (i32, i32) {
    %c0_i32 = arith.constant 0 : i32
    %c0_i32_0 = arith.constant 0 : i32
    %c0_i32_1 = arith.constant 0 : i32
    return %c0_i32, %c0_i32_0 : i32, i32
  }
  func.func @transform_4(%arg0: i32) -> (i32, i32, i32) {
    %c0_i32 = arith.constant 0 : i32
    %c0_i32_0 = arith.constant 0 : i32
    %c0_i32_1 = arith.constant 0 : i32
    %c0_i32_2 = arith.constant 0 : i32
    return %c0_i32, %c0_i32_0, %c0_i32_1 : i32, i32, i32
  }
  func.func @transform_5(%arg0: i32) -> (i32, i32, i32) {
    %c0_i32 = arith.constant 0 : i32
    %c0_i32_0 = arith.constant 0 : i32
    %c0_i32_1 = arith.constant 0 : i32
    %c0_i32_2 = arith.constant 0 : i32
    return %c0_i32, %c0_i32_0, %c0_i32_1 : i32, i32, i32
  }
  func.func @transform_6(%arg0: i32) -> (i32, i32, i32) {
    %c0_i32 = arith.constant 0 : i32
    %c0_i32_0 = arith.constant 0 : i32
    %c0_i32_1 = arith.constant 0 : i32
    %c0_i32_2 = arith.constant 0 : i32
    return %c0_i32, %c0_i32_0, %c0_i32_1 : i32, i32, i32
  }
  func.func @transform_7(%arg0: i32) -> (i32, i32, i32) {
    %c0_i32 = arith.constant 0 : i32
    %c0_i32_0 = arith.constant 0 : i32
    %c0_i32_1 = arith.constant 0 : i32
    %c0_i32_2 = arith.constant 0 : i32
    return %c0_i32, %c0_i32_0, %c0_i32_1 : i32, i32, i32
  }
  func.func @transform_8(%arg0: i32) -> (i32, i32) {
    %c0_i32 = arith.constant 0 : i32
    %c0_i32_0 = arith.constant 0 : i32
    %c0_i32_1 = arith.constant 0 : i32
    return %c0_i32, %c0_i32_0 : i32, i32
  }
  func.func @transform_9(%arg0: i32) -> (i32, i32) {
    %c0_i32 = arith.constant 0 : i32
    %c0_i32_0 = arith.constant 0 : i32
    %c0_i32_1 = arith.constant 0 : i32
    return %c0_i32, %c0_i32_0 : i32, i32
  }
  func.func @transform_10(%arg0: i32) -> (i32, i32) {
    %c0_i32 = arith.constant 0 : i32
    %c0_i32_0 = arith.constant 0 : i32
    %c0_i32_1 = arith.constant 0 : i32
    return %c0_i32, %c0_i32_0 : i32, i32
  }
  func.func @transform_11(%arg0: i32) -> (i32, i32) {
    %c0_i32 = arith.constant 0 : i32
    %c0_i32_0 = arith.constant 0 : i32
    %c0_i32_1 = arith.constant 0 : i32
    return %c0_i32, %c0_i32_0 : i32, i32
  }
  func.func @transform_12(%arg0: i32) -> (i32, i32) {
    %c0_i32 = arith.constant 0 : i32
    %c0_i32_0 = arith.constant 0 : i32
    %c0_i32_1 = arith.constant 0 : i32
    return %c0_i32, %c0_i32_0 : i32, i32
  }
  func.func @transform_13(%arg0: i32) -> (i32, i32, i32) {
    %c0_i32 = arith.constant 0 : i32
    %c0_i32_0 = arith.constant 0 : i32
    %c0_i32_1 = arith.constant 0 : i32
    return %arg0, %c0_i32, %c0_i32_0 : i32, i32, i32
  }
}

</mosaic_0001>

<bundles_post_ra>
// kernel: tpu_custom_call.1
= control target key start
LH: loop header
LB: loop body
LE: loop exit
PB: predicated region body
PF: predicated region fallthrough
CT: control target
= control target key end

     0   :  { %s4599_s0 = inlined_call_operand.vmem [shape: f32[2,16,128], index: 0, kind: input, shape index: {}]   ;;  %s4600_s1 = inlined_call_operand.vmem [shape: f32[2,16,16], index: 1, kind: input, shape index: {}]   ;;  %s4601_s2 = inlined_call_operand.vmem [shape: f32[16,32], index: 2, kind: input, shape index: {}]   ;;  %s4602_s3 = inlined_call_operand.vmem [shape: f32[16,32], index: 3, kind: input, shape index: {}]   ;;  %s4603_s4 = inlined_call_operand.vmem [shape: bf16[4,128,32], index: 4, kind: input, shape index: {}]   ;;  %s4604_s5 = inlined_call_operand.vmem [shape: bf16[2,128,32], index: 5, kind: input, shape index: {}]   ;;  %s4605_s6 = inlined_call_operand.vmem [shape: bf16[2,128,32], index: 6, kind: input, shape index: {}]   ;;  %s4606_s7 = inlined_call_operand.vmem [shape: bf16[4,32,128], index: 7, kind: input, shape index: {}]   ;;  %s4607_s8 = inlined_call_operand.vmem [shape: bf16[128,256], index: 8, kind: input, shape index: {}]   ;;  %s4608_s9 = inlined_call_operand.vmem [shape: bf16[128,256], index: 9, kind: input, shape index: {}]   ;;  %s4609_s10 = inlined_call_operand.vmem [shape: bf16[256,128], index: 10, kind: input, shape index: {}]   ;;  %s4610_s11 = inlined_call_operand.vmem [shape: f32[1,128], index: 11, kind: input, shape index: {}]   ;;  %s4611_s12 = inlined_call_operand.vmem [shape: f32[1,128], index: 12, kind: input, shape index: {}]   ;;  %s4612_s13 = inlined_call_operand.hbm [shape: f32[2,16,128], index: 13, kind: output, shape index: {}]  }
   0x1   :  { %4619 = sst [smem:[#allocation7_spill]] %s4599_s0 }
   0x2   :  { %4620 = sst [smem:[#allocation8_spill]] %s4600_s1 }
   0x3   :  { %18 = vsyncpa [#allocation3], 0 }
   0x4   :  { %20 = vsyncpa [#allocation3 + $0x1], 0  ;;  %s3807_s25 = smov 0   ;;  %s3809_s26 = smov 0  }
   0x5   :  { %s3811_s27 = smov 0   ;;  %s3813_s28 = smov 0  }
   0x6 LB: > { %4621 = sst [smem:[#allocation5_spill]] %s3723_s27  ;;  %s3828_s29 = sadd.s32 4294967295, %s3727_s28   ;;  %s3727_s28 = sphi %s3813_s28, %s4634_s28   ;;  %s3723_s27 = sphi %s3811_s27, %s4631_s27   ;;  %s3719_s26 = sphi %s3809_s26, %s4633_s26   ;;  %s3715_s25 = sphi %s3807_s25, %s4632_s25  }
   0x7   : > { %s2820_s30 = sadd.s32 4294967294, %s3727_s28   ;;  %s3832_s14 = sadd.s32 1, %s3727_s28  }
   0x8   : > { %s316_s15 = sadd.s32 1, %s3723_s27  ;;  %s313_s16 = ssub.s32 %s3727_s28, %s3832_s14 }
   0x9   : > { %p326_p0 = scmp.ne.s32.totalorder %s3723_s27, %s3719_s26  ;;  %p314_p1 = scmp.eq.s32.totalorder %s313_s16, 0 }
   0xa   : > { %p327_p2 = scmp.eq.s32.totalorder %s3828_s29, 1  ;;  %p332_p3 = scmp.ne.s32.totalorder %s3719_s26, %s3715_s25 }
   0xb   : > { %p333_p4 = scmp.eq.s32.totalorder %s2820_s30, 1  ;;  %p2823_p7 = scmp.ge.s32.totalorder %s3727_s28, 1 }
   0xc   : > { %s3843_s17 = scalar_select %p314_p1, %s3723_s27, %s316_s15  }
   0xd   : > { %p3845_p5 = por %p327_p2, %p326_p0  ;;  %p3849_p6 = por %p333_p4, %p332_p3 }
   0xe   : > { %4622 = sst [smem:[#allocation6_spill]] %s3843_s17  ;;  %p400_p8 = scmp.lt.s32.totalorder %s3727_s28, 3 }
  0x10   : > { %p401_p9 = pnand %p2823_p7, %p400_p8 }
  0x11   : > { %p449_p10 = scmp.lt.s32.totalorder (!%p401_p9), %s3828_s29, 1  ;;  %v3729_v0 = vmov (!%p401_p9), 0.0   ;;  %v3471_v1 = vld [vmem:[%s4604_s5] sm:$0xff] (!%p401_p9)   ;;  %v3473_v3 = vld [vmem:[%s4604_s5 + $0x8] sm:$0xff] (!%p401_p9)   ;;  %s4625_s0 = sld [smem:[#allocation7_spill]] (!%p401_p9)  ;;  %v3475_v9 = vld [vmem:[%s4604_s5 + $0x10] sm:$0xff] (!%p401_p9)  }
  0x12   : > { %404 = sbr.rel (%p401_p9) target bundleno = 5382 (0x1506), region = 72  ;;  %3185 = vmatprep.subr.bf16.mxu0 (!%p401_p9), %v3729_v0  ;;  %3205 = vmatprep.subr.bf16.mxu1 (!%p401_p9), %v3729_v0  ;;  %v3472_v2 = vld [vmem:[%s4605_s6] sm:$0xff] (!%p401_p9)   ;;  %v3474_v4 = vld [vmem:[%s4605_s6 + $0x8] sm:$0xff] (!%p401_p9)   ;;  %v3476_v10 = vld [vmem:[%s4605_s6 + $0x10] sm:$0xff] (!%p401_p9)   ;;  %vm3730_vm0 = vmmov (!%p401_p9), 0   ;;  %s4615_s24 = smov (!%p401_p9), 16  }
  0x13   : > { %3186 = vmatpush3.bf16.msra.mxu0 (!%p401_p9), %v3471_v1  ;;  %3206 = vmatpush3.bf16.msra.mxu1 (!%p401_p9), %v3472_v2  ;;  %v3477_v11 = vld [vmem:[%s4604_s5 + $0x18] sm:$0xff] (!%p401_p9)   ;;  %v3479_v13 = vld [vmem:[%s4604_s5 + $0x20] sm:$0xff] (!%p401_p9)   ;;  %v3481_v15 = vld [vmem:[%s4604_s5 + $0x28] sm:$0xff] (!%p401_p9)   ;;  %s4617_s30 = smov (!%p401_p9), 112   ;;  %vm721_vm1 = vcmask (!%p401_p9), 130048   ;;  %vm1104_vm2 = vcmask (!%p401_p9), 261120  }
  0x14   : > { %3187 = vmatprep.subr.bf16.mxu0 (!%p401_p9), %v3729_v0  ;;  %3207 = vmatprep.subr.bf16.mxu1 (!%p401_p9), %v3729_v0  ;;  %v3478_v12 = vld [vmem:[%s4605_s6 + $0x18] sm:$0xff] (!%p401_p9)   ;;  %v3480_v14 = vld [vmem:[%s4605_s6 + $0x20] sm:$0xff] (!%p401_p9)   ;;  %v3482_v16 = vld [vmem:[%s4605_s6 + $0x28] sm:$0xff] (!%p401_p9)   ;;  %s4627_s1 = sld [smem:[#allocation8_spill]] (!%p401_p9)  ;;  %s446_s20 = sand.u32 (!%p401_p9), 1, %s3719_s26  }
  0x15   : > { %v3483_v17 = vld [vmem:[%s4604_s5 + $0x30] sm:$0xff] (!%p401_p9)   ;;  %v3485_v19 = vld [vmem:[%s4604_s5 + $0x38] sm:$0xff] (!%p401_p9)   ;;  %3201 = vmatprep.mubr.msk.bf16.mxu0 (!%p401_p9), %vm3730_vm0, %v3729_v0  ;;  %3221 = vmatprep.mubr.msk.bf16.mxu1 (!%p401_p9), %vm3730_vm0, %v3729_v0  ;;  %v2829_v30 = vld [vmem:[%s4610_s11] ss:$0 sm:$0xff] (!%p401_p9)  ;;  %s4558_s27 = scalar_lea.sflag (!%p401_p9), [#allocation3], %s446_s20 }
  0x16   : > { %v3484_v18 = vld [vmem:[%s4605_s6 + $0x30] sm:$0xff] (!%p401_p9)   ;;  %v3486_v20 = vld [vmem:[%s4605_s6 + $0x38] sm:$0xff] (!%p401_p9)   ;;  %v3487_v34 = vld [vmem:[%s4604_s5 + $0x40] sm:$0xff] (!%p401_p9)  }
  0x17   : > { %3188 = vmatpush3.bf16.msra.mxu0 (!%p401_p9), %v3473_v3  ;;  %3208 = vmatpush3.bf16.msra.mxu1 (!%p401_p9), %v3474_v4  ;;  %v3488_v35 = vld [vmem:[%s4605_s6 + $0x40] sm:$0xff] (!%p401_p9)   ;;  %v3489_v37 = vld [vmem:[%s4604_s5 + $0x48] sm:$0xff] (!%p401_p9)   ;;  %v3491_v39 = vld [vmem:[%s4604_s5 + $0x50] sm:$0xff] (!%p401_p9)  }
  0x18   : > { %3189 = vmatprep.subr.bf16.mxu0 (!%p401_p9), %v3729_v0  ;;  %3209 = vmatprep.subr.bf16.mxu1 (!%p401_p9), %v3729_v0  ;;  %v3490_v38 = vld [vmem:[%s4605_s6 + $0x48] sm:$0xff] (!%p401_p9)   ;;  %v3492_v40 = vld [vmem:[%s4605_s6 + $0x50] sm:$0xff] (!%p401_p9)   ;;  %v3493_v41 = vld [vmem:[%s4604_s5 + $0x58] sm:$0xff] (!%p401_p9)  }
  0x19   : > { %s3862_s22 = scalar_select %p449_p10, %s3828_s29, 1  ;;  %v3494_v42 = vld [vmem:[%s4605_s6 + $0x58] sm:$0xff]   ;;  %v3495_v43 = vld [vmem:[%s4604_s5 + $0x60] sm:$0xff]   ;;  %v3497_v45 = vld [vmem:[%s4604_s5 + $0x68] sm:$0xff]  }
  0x1a   : > { %v3496_v44 = vld [vmem:[%s4605_s6 + $0x60] sm:$0xff]   ;;  %v3498_v46 = vld [vmem:[%s4605_s6 + $0x68] sm:$0xff]   ;;  %v3499_v47 = vld [vmem:[%s4604_s5 + $0x70] sm:$0xff]  }
  0x1b   : > { %s4614_s16 = sshll.u32 %s3862_s22, 4  ;;  %3190 = vmatpush3.bf16.msra.mxu0 %v3475_v9  ;;  %3210 = vmatpush3.bf16.msra.mxu1 %v3476_v10  ;;  %v3500_v48 = vld [vmem:[%s4605_s6 + $0x70] sm:$0xff]   ;;  %v3501_v49 = vld [vmem:[%s4604_s5 + $0x78] sm:$0xff]   ;;  %v3503_v51 = vld [vmem:[%s4603_s4] sm:$0xff]  }
  0x1c   : > { %s3880_s23 = scalar_lea.vmem %s4625_s0, %s4614_s16  ;;  %3191 = vmatprep.subr.bf16.mxu0 %v3729_v0  ;;  %3211 = vmatprep.subr.bf16.mxu1 %v3729_v0  ;;  %v3502_v50 = vld [vmem:[%s4605_s6 + $0x78] sm:$0xff]   ;;  %v3504_v52 = vld [vmem:[%s4603_s4 + $0x8] sm:$0xff]   ;;  %v3505_v53 = vld [vmem:[%s4603_s4 + $0x10] sm:$0xff]   ;;  %s4628_s16 = smov 112  }
  0x1d   : > { %v460_v5 = vld [vmem:[%s3880_s23] sm:$0xff]  ;;  %v461_v7 = vld [vmem:[%s3880_s23 + $0x8] sm:$0xff]  ;;  %v3506_v54 = vld [vmem:[%s4603_s4 + $0x18] sm:$0xff]  }
  0x1e   : > { %v463_v6 = vmul.f32 %v460_v5, %v460_v5  ;;  %v464_v8 = vmul.f32 %v461_v7, %v461_v7  ;;  %v3507_v55 = vld [vmem:[%s4603_s4 + $0x20] sm:$0xff]   ;;  %v3508_v56 = vld [vmem:[%s4603_s4 + $0x28] sm:$0xff]   ;;  %v3509_v57 = vld [vmem:[%s4603_s4 + $0x30] sm:$0xff]  }
  0x1f   : > { %3192 = vmatpush3.bf16.msra.mxu0 %v3477_v11  ;;  %3212 = vmatpush3.bf16.msra.mxu1 %v3478_v12  ;;  %v3510_v58 = vld [vmem:[%s4603_s4 + $0x38] sm:$0xff]  }
  0x20   : > { %465 = vadd.xlane.f32.xlu0 %v463_v6  ;;  %3193 = vmatprep.subr.bf16.mxu0 %v3729_v0 }
  0x21   : > { %3213 = vmatprep.subr.bf16.mxu1 %v3729_v0 }
  0x23   : > { %3194 = vmatpush3.bf16.msra.mxu0 %v3479_v13  ;;  %3214 = vmatpush3.bf16.msra.mxu1 %v3480_v14 }
  0x24   : > { %467 = vadd.xlane.f32.xlu0 %v464_v8  ;;  %3195 = vmatprep.subr.bf16.mxu0 %v3729_v0 }
  0x25   : > { %3215 = vmatprep.subr.bf16.mxu1 %v3729_v0 }
  0x27   : > { %3196 = vmatpush3.bf16.msra.mxu0 %v3481_v15  ;;  %3216 = vmatpush3.bf16.msra.mxu1 %v3482_v16 }
  0x28   : > { %3197 = vmatprep.subr.bf16.mxu0 %v3729_v0  ;;  %3217 = vmatprep.subr.bf16.mxu1 %v3729_v0 }
  0x2b   : > { %3198 = vmatpush3.bf16.msra.mxu0 %v3483_v17  ;;  %3218 = vmatpush3.bf16.msra.mxu1 %v3484_v18 }
  0x2c   : > { %3199 = vmatprep.subr.bf16.mxu0 %v3729_v0  ;;  %3219 = vmatprep.subr.bf16.mxu1 %v3729_v0 }
  0x2f   : > { %3200 = vmatpush3.bf16.msra.mxu0 %v3485_v19  ;;  %3220 = vmatpush3.bf16.msra.mxu1 %v3486_v20 }
  0x30   : > { %3225 = vmatprep.subr.bf16.mxu0 %v3729_v0  ;;  %3245 = vmatprep.subr.bf16.mxu1 %v3729_v0 }
  0xad   : > { %v466_v21 = vpop.xlane.xlu0 %465 }
  0xae   : > { %v470_v22 = vmul.f32 0.0078125, %v466_v21 }
  0xb0   : > { %v472_v23 = vadd.f32 1e-06, %v470_v22 }
  0xb1   : > { %v468_v24 = vpop.xlane.xlu0 %467 }
  0xb2   : > { %3607 = vrsqrt.f32 %v472_v23  ;;  %v471_v25 = vmul.f32 0.0078125, %v468_v24 }
  0xb4   : > { %v473_v26 = vadd.f32 1e-06, %v471_v25  ;;  %v4074_v25 = vld [vmem:[%s4602_s3] sm:$0xff] }
  0xb6   : > { %3609 = vrsqrt.f32 %v473_v26 }
  0xbc   : > { %v3608_v27 = vpop.eup %3607 }
  0xbd   : > { %v476_v28 = vmul.f32 %v3608_v27, %v460_v5  ;;  %v4080_v27 = vld [vmem:[%s4601_s2] sm:$0xff] }
  0xbf   : > { %v484_v32 = vmul.f32 %v2829_v30, %v476_v28  ;;  %v4085_v28 = vld [vmem:[%s4601_s2 + $0x8] sm:$0xff] }
  0xc0   : > { %v3610_v29 = vpop.eup %3609 }
  0xc1   : > { %v477_v31 = vmul.f32 %v3610_v29, %v461_v7  ;;  %v4090_v29 = vld [vmem:[%s4602_s3 + $0x8] sm:$0xff] }
  0xc3   : > { %v485_v33 = vmul.f32 %v2829_v30, %v477_v31 }
  0xc5   : > { %v3948_v36 = vpack.c.bf16 %v485_v33, %v484_v32 }
  0xc7   : > { %3202 = vmatmul.mubr.bf16.vlgmr.msra.gmra.mrb[0].mxu0 %v3948_v36  ;;  %3222 = vmatmul.mubr.bf16.vlgmr.msra.gmra.mrb[0].mxu1 %v3948_v36 }
  0xc8   : > { %3226 = vmatpush3.bf16.msra.mxu0 %v3487_v34  ;;  %3246 = vmatpush3.bf16.msra.mxu1 %v3488_v35 }
  0xc9   : > { %3227 = vmatprep.subr.bf16.mxu0 %v3729_v0  ;;  %3247 = vmatprep.subr.bf16.mxu1 %v3729_v0 }
  0xca   : > { %3241 = vmatprep.mubr.msk.bf16.mxu0 %vm3730_vm0, %v3729_v0  ;;  %3261 = vmatprep.mubr.msk.bf16.mxu1 %vm3730_vm0, %v3729_v0 }
  0xcc   : > { %3228 = vmatpush3.bf16.msra.mxu0 %v3489_v37  ;;  %3248 = vmatpush3.bf16.msra.mxu1 %v3490_v38 }
  0xcd   : > { %3229 = vmatprep.subr.bf16.mxu0 %v3729_v0  ;;  %3249 = vmatprep.subr.bf16.mxu1 %v3729_v0 }
  0xd0   : > { %3230 = vmatpush3.bf16.msra.mxu0 %v3491_v39  ;;  %3250 = vmatpush3.bf16.msra.mxu1 %v3492_v40 }
  0xd1   : > { %3231 = vmatprep.subr.bf16.mxu0 %v3729_v0  ;;  %3251 = vmatprep.subr.bf16.mxu1 %v3729_v0 }
  0xd4   : > { %3232 = vmatpush3.bf16.msra.mxu0 %v3493_v41  ;;  %3252 = vmatpush3.bf16.msra.mxu1 %v3494_v42 }
  0xd5   : > { %3233 = vmatprep.subr.bf16.mxu0 %v3729_v0  ;;  %3253 = vmatprep.subr.bf16.mxu1 %v3729_v0 }
  0xd8   : > { %3234 = vmatpush3.bf16.msra.mxu0 %v3495_v43  ;;  %3254 = vmatpush3.bf16.msra.mxu1 %v3496_v44 }
  0xd9   : > { %3235 = vmatprep.subr.bf16.mxu0 %v3729_v0  ;;  %3255 = vmatprep.subr.bf16.mxu1 %v3729_v0 }
  0xdc   : > { %3236 = vmatpush3.bf16.msra.mxu0 %v3497_v45  ;;  %3256 = vmatpush3.bf16.msra.mxu1 %v3498_v46 }
  0xdd   : > { %3237 = vmatprep.subr.bf16.mxu0 %v3729_v0  ;;  %3257 = vmatprep.subr.bf16.mxu1 %v3729_v0 }
  0xe0   : > { %3238 = vmatpush3.bf16.msra.mxu0 %v3499_v47  ;;  %3258 = vmatpush3.bf16.msra.mxu1 %v3500_v48 }
  0xe1   : > { %3239 = vmatprep.subr.bf16.mxu0 %v3729_v0  ;;  %3259 = vmatprep.subr.bf16.mxu1 %v3729_v0 }
  0xe4   : > { %3240 = vmatpush3.bf16.msra.mxu0 %v3501_v49  ;;  %3260 = vmatpush3.bf16.msra.mxu1 %v3502_v50 }
  0xe5   : > { %3265 = vmatprep.subr.bf16.mxu0 %v3729_v0  ;;  %3285 = vmatprep.subr.bf16.mxu1 %v3729_v0 }
  0xe7   : > { %3242 = vmatmul.mubr.bf16.vlgmr.msra.gmra.mrb[4].mxu0 %v3948_v36  ;;  %3262 = vmatmul.mubr.bf16.vlgmr.msra.gmra.mrb[4].mxu1 %v3948_v36 }
  0xe8   : > { %3266 = vmatpush3.bf16.msra.mxu0 %v3503_v51  ;;  %3281 = vmatprep.mubr.msk.bf16.mxu0 %vm3730_vm0, %v3729_v0 }
  0xe9   : > { %3267 = vmatprep.subr.bf16.mxu0 %v3729_v0  ;;  %3287 = vmatprep.mubr.msk.bf16.mxu1 %vm3730_vm0, %v3729_v0 }
  0xec   : > { %3268 = vmatpush3.bf16.msra.mxu0 %v3504_v52 }
  0xed   : > { %3269 = vmatprep.subr.bf16.mxu0 %v3729_v0 }
  0xf0   : > { %3270 = vmatpush3.bf16.msra.mxu0 %v3505_v53 }
  0xf1   : > { %3271 = vmatprep.subr.bf16.mxu0 %v3729_v0 }
  0xf4   : > { %3272 = vmatpush3.bf16.msra.mxu0 %v3506_v54 }
  0xf5   : > { %3273 = vmatprep.subr.bf16.mxu0 %v3729_v0 }
  0xf8   : > { %3274 = vmatpush3.bf16.msra.mxu0 %v3507_v55 }
  0xf9   : > { %3275 = vmatprep.subr.bf16.mxu0 %v3729_v0 }
  0xfc   : > { %3276 = vmatpush3.bf16.msra.mxu0 %v3508_v56 }
  0xfd   : > { %3277 = vmatprep.subr.bf16.mxu0 %v3729_v0 }
 0x100   : > { %3278 = vmatpush3.bf16.msra.mxu0 %v3509_v57 }
 0x101   : > { %3279 = vmatprep.subr.bf16.mxu0 %v3729_v0 }
 0x104   : > { %3280 = vmatpush3.bf16.msra.mxu0 %v3510_v58 }
 0x105   : > { %3329 = vmatprep.subr.bf16.mxu0 %v3729_v0 }
 0x107   : > { %3282 = vmatmul.mubr.bf16.vlgmr.msra.gmra.mrb[8].mxu0 %v3948_v36 }
 0x108   : > { %3333 = vmatprep.mubr.msk.bf16.mxu0 %vm3730_vm0, %v3729_v0 }
 0x19a   : > { %v591_v59 = vpop.f32.mrb[0].mxu0  ;;  %v696_v60 = vpop.f32.mrb[0].mxu1 }
 0x19b   : > { %v3223_v61 = vpop.f32.mrb[1].mxu1  ;;  %715 = vrot.lane.b32.xlu0 %v591_v59, %s4615_s24  ;;  %v3203_v62 = vpop.f32.mrb[1].mxu0  ;;  %v703_v63 = vsub.f32 0.0, %v591_v59  ;;  %v724_v33 = vmul.f32 %v591_v59, %v4080_v27 }
 0x19c   : > { %v594_v1 = vpop.f32.mrb[2].mxu0  ;;  %v699_v2 = vpop.f32.mrb[2].mxu1 }
 0x19d   : > { %v4056_v3 = vpack.c.bf16 %v699_v2, %v696_v60  ;;  %v3224_v4 = vpop.f32.mrb[3].mxu1  ;;  %707 = vrot.lane.b32.xlu1 %v703_v63, %s4617_s30  ;;  %v3204_v5 = vpop.f32.mrb[3].mxu0  ;;  %v704_v6 = vsub.f32 0.0, %v594_v1  ;;  %v725_v34 = vmul.f32 %v594_v1, %v4085_v28 }
 0x1a1   : > { %717 = vrot.lane.b32.xlu1 %v594_v1, %s4615_s24 }
 0x1a5   : > { %709 = vrot.lane.b32.xlu1 %v704_v6, %s4617_s30 }
 0x1ba   : > { %v4061_v7 = vpop.f32.mrb[4].mxu0  ;;  %v937_v8 = vpop.f32.mrb[4].mxu1 }
 0x1bb   : > { %v3243_v9 = vpop.f32.mrb[5].mxu0  ;;  %v3263_v10 = vpop.f32.mrb[5].mxu1 }
 0x1bc   : > { %v4063_v11 = vpop.f32.mrb[6].mxu0  ;;  %v940_v12 = vpop.f32.mrb[6].mxu1 }
 0x1bd   : > { %v4065_v13 = vpack.c.bf16 %v940_v12, %v937_v8  ;;  %v3244_v14 = vpop.f32.mrb[7].mxu0  ;;  %v3264_v15 = vpop.f32.mrb[7].mxu1 }
 0x1da   : > { %v1070_v16 = vpop.f32.mrb[8].mxu0 }
 0x1db   : > { %1089 = vrot.lane.b32.xlu1 %v1070_v16, %s4615_s24  ;;  %v3283_v17 = vpop.f32.mrb[9].mxu0  ;;  %v1077_v19 = vsub.f32 0.0, %v1070_v16  ;;  %v1097_v48 = vmul.f32 %v1070_v16, %v4080_v27 }
 0x1dc   : > { %v1073_v18 = vpop.f32.mrb[10].mxu0 }
 0x1dd   : > { %v3284_v20 = vpop.f32.mrb[11].mxu0  ;;  %v1078_v21 = vsub.f32 0.0, %v1073_v18  ;;  %v1098_v49 = vmul.f32 %v1073_v18, %v4085_v28 }
 0x1df   : > { %1081 = vrot.lane.b32.xlu1 %v1077_v19, %s4617_s30 }
 0x1e3   : > { %1083 = vrot.lane.b32.xlu1 %v1078_v21, %s4617_s30 }
 0x1e7   : > { %1091 = vrot.lane.b32.xlu1 %v1073_v18, %s4615_s24  ;;  %s4626_s24 = sshll.u32 %s3862_s22, 4 }
 0x1e8   : > { %s458_s15 = scalar_lea.vmem %s4627_s1, %s4626_s24  ;;  %s3062_s1 = sshll.u32 %s3828_s29, 8 }
 0x1e9   : > { %v4118_v54 = vld [vmem:[%s458_s15] sm:$0xff]  ;;  %v4120_v58 = vld [vmem:[%s458_s15 + $0x8] sm:$0xff]  ;;  %s4629_s15 = smov 16   ;;  %s4556_s17 = scalar_lea.hbm %s4612_s13, %s3062_s1 }
 0x1ea   : > { %s3734_s24 = smov [#allocation2]  }
 0x1eb   : > { %s3669_s30 = sshll.u32 %s3734_s24, 4  ;;  %s3670_s30 = int_to_ptr.vmem [resolvable:$false] %s3669_s30 }
 0x1ec   : > { %s3671_s22 = scalar_lea.vmem %s3670_s30, 512 }
 0x20d   : > { %v716_v23 = vpop.permute.xlu0 %715 }
 0x20f   : > { %v708_v22 = vpop.permute.xlu1 %707 }
 0x210   : > { %v722_v26 = vsel %vm721_vm1, %v708_v22, %v716_v23  ;;  %v3511_v23 = vld [vmem:[%s4603_s4 + $0x40] sm:$0xff]  }
 0x211   : > { %v726_v30 = vmul.f32 %v722_v26, %v4074_v25  ;;  %v3512_v26 = vld [vmem:[%s4603_s4 + $0x48] sm:$0xff]  }
 0x213   : > { %v718_v24 = vpop.permute.xlu1 %717  ;;  %v728_v37 = vadd.f32 %v726_v30, %v724_v33  ;;  %v3513_v30 = vld [vmem:[%s4603_s4 + $0x50] sm:$0xff]   ;;  %v3516_v33 = vld [vmem:[%s4603_s4 + $0x68] sm:$0xff]  }
 0x217   : > { %v710_v31 = vpop.permute.xlu1 %709 }
 0x218   : > { %v723_v32 = vsel %vm721_vm1, %v710_v31, %v718_v24  ;;  %v3514_v31 = vld [vmem:[%s4603_s4 + $0x58] sm:$0xff]  }
 0x219   : > { %v727_v35 = vmul.f32 %v723_v32, %v4090_v29  ;;  %v3515_v32 = vld [vmem:[%s4603_s4 + $0x60] sm:$0xff]  }
 0x21b   : > { %v729_v38 = vadd.f32 %v727_v35, %v725_v34  ;;  %v3517_v34 = vld [vmem:[%s4603_s4 + $0x70] sm:$0xff]   ;;  %v3518_v35 = vld [vmem:[%s4603_s4 + $0x78] sm:$0xff]  }
 0x21d   : > { %v730_v39 = vpack.c.bf16 %v729_v38, %v728_v37 }
 0x21f   : > { %v4098_v40 = vsel %vm1104_vm2, %v730_v39, 0 }
 0x220   : > { %3286 = vmatpush3.bf16.xpose.msra.mxu1 %v4098_v40 }
 0x221   : > { %3291 = vmatprep.subr.bf16.mxu1 %v3729_v0 }
 0x24d   : > { %v1090_v41 = vpop.permute.xlu1 %1089 }
 0x251   : > { %v1082_v42 = vpop.permute.xlu1 %1081 }
 0x252   : > { %v1095_v44 = vsel %vm721_vm1, %v1082_v42, %v1090_v41 }
 0x253   : > { %v1099_v45 = vmul.f32 %v1095_v44, %v4074_v25 }
 0x255   : > { %v1084_v43 = vpop.permute.xlu1 %1083  ;;  %v1101_v51 = vadd.f32 %v1099_v45, %v1097_v48 }
 0x259   : > { %v1092_v46 = vpop.permute.xlu1 %1091 }
 0x25a   : > { %v1096_v47 = vsel %vm721_vm1, %v1084_v43, %v1092_v46 }
 0x25b   : > { %v1100_v50 = vmul.f32 %v1096_v47, %v4090_v29 }
 0x25d   : > { %v1102_v52 = vadd.f32 %v1100_v50, %v1098_v49 }
 0x25f   : > { %v1103_v53 = vpack.c.bf16 %v1102_v52, %v1101_v51 }
 0x261   : > { %3288 = vmatmul.mubr.msk.bf16.vlgmr.msra.gmra.mrb[8].mxu1 %vm1104_vm2, %v1103_v53 }
 0x262   : > { %3292 = vmatpush3.bf16.msra.mxu1 %v4056_v3  ;;  %3293 = vmatprep.mubr.msk.bf16.mxu1 %vm3730_vm0, %v3729_v0 }
 0x263   : > { %3297 = vmatprep.subr.bf16.mxu1 %v3729_v0 }
 0x334   : > { %v1145_v55 = vpop.f32.mrb[8].mxu1 }
 0x335   : > { %v1152_v56 = vmul.f32 0.17677669, %v1145_v55  ;;  %v3289_v57 = vpop.f32.mrb[9].mxu1 }
 0x336   : > { %v1148_v59 = vpop.f32.mrb[10].mxu1 }
 0x337   : > { %v1153_v60 = vmul.f32 0.17677669, %v1148_v59  ;;  %v3290_v61 = vpop.f32.mrb[11].mxu1  ;;  %v1154_v62 = vadd.f32 %v1152_v56, %v4118_v54 }
 0x339   : > { %v1156_v63 = vsel %vm721_vm1, %v1154_v62, -inf  ;;  %v1155_v1 = vadd.f32 %v1153_v60, %v4120_v58 }
 0x33a   : > { %1157 = vmax.xlane.f32.xlu1 %v1156_v63 }
 0x33b   : > { %v1159_v2 = vsel %vm721_vm1, %v1155_v1, -inf }
 0x33c   : > { %1160 = vmax.xlane.f32.xlu0 %v1159_v2 }
 0x3c7   : > { %v1158_v4 = vpop.xlane.xlu1 %1157 }
 0x3c8   : > { %v1162_v5 = vsub.f32 %v1154_v62, %v1158_v4 }
 0x3c9   : > { %v1161_v6 = vpop.xlane.xlu0 %1160 }
 0x3ca   : > { %v1164_v8 = vmul.f32 1.442695, %v1162_v5  ;;  %v1163_v9 = vsub.f32 %v1155_v1, %v1161_v6 }
 0x3cc   : > { %3611 = vpow2.f32 %v1164_v8  ;;  %v1166_v10 = vmul.f32 1.442695, %v1163_v9 }
 0x3ce   : > { %3613 = vpow2.f32 %v1166_v10 }
 0x3d6   : > { %v3612_v12 = vpop.eup %3611 }
 0x3d7   : > { %v1168_v14 = vsel %vm721_vm1, %v3612_v12, 0.0 }
 0x3d8   : > { %v3614_v15 = vpop.eup %3613  ;;  %1169 = vadd.xlane.f32.xlu0 %v1168_v14 }
 0x3d9   : > { %v1171_v16 = vsel %vm721_vm1, %v3614_v15, 0.0 }
 0x3da   : > { %1172 = vadd.xlane.f32.xlu1 %v1171_v16 }
 0x465   : > { %v1170_v17 = vpop.xlane.xlu0 %1169 }
 0x466   : > { %3615 = vrcp.f32 %v1170_v17 }
 0x467   : > { %v1173_v18 = vpop.xlane.xlu1 %1172 }
 0x468   : > { %3617 = vrcp.f32 %v1173_v18 }
 0x470   : > { %v3616_v19 = vpop.eup %3615 }
 0x471   : > { %v1176_v21 = vmul.f32 %v3616_v19, %v3612_v12 }
 0x472   : > { %v3618_v20 = vpop.eup %3617 }
 0x473   : > { %v1177_v22 = vmul.f32 %v3618_v20, %v3614_v15 }
 0x475   : > { %v1178_v24 = vpack.c.bf16 %v1177_v22, %v1176_v21 }
 0x477   : > { %3294 = vmatmul.mubr.msk.bf16.vlgmr.msra.gmra.mrb[12].mxu1 %vm721_vm1, %v1178_v24  ;;  %v944_v24 = vsub.f32 0.0, %v4061_v7 }
 0x478   : > { %3298 = vmatpush3.bf16.msra.mxu1 %v3511_v23  ;;  %3313 = vmatprep.mubr.msk.bf16.mxu1 %vm3730_vm0, %v3729_v0  ;;  %v945_v23 = vsub.f32 0.0, %v4063_v11 }
 0x479   : > { %3299 = vmatprep.subr.bf16.mxu1 %v3729_v0 }
 0x47c   : > { %3300 = vmatpush3.bf16.msra.mxu1 %v3512_v26  ;;  %v3521_v26 = vld [vmem:[%s4606_s7 + $0x10] sm:$0xff]  }
 0x47d   : > { %3301 = vmatprep.subr.bf16.mxu1 %v3729_v0  ;;  %3330 = vmatpush3.bf16.msra.mxu0 %v3521_v26 }
 0x47e   : > { %3331 = vmatprep.subr.bf16.mxu0 %v3729_v0 }
 0x480   : > { %3302 = vmatpush3.bf16.msra.mxu1 %v3513_v30 }
 0x481   : > { %3303 = vmatprep.subr.bf16.mxu1 %v3729_v0 }
 0x484   : > { %3304 = vmatpush3.bf16.msra.mxu1 %v3514_v31 }
 0x485   : > { %3305 = vmatprep.subr.bf16.mxu1 %v3729_v0 }
 0x488   : > { %3306 = vmatpush3.bf16.msra.mxu1 %v3515_v32 }
 0x489   : > { %3307 = vmatprep.subr.bf16.mxu1 %v3729_v0 }
 0x48c   : > { %3308 = vmatpush3.bf16.msra.mxu1 %v3516_v33 }
 0x48d   : > { %3309 = vmatprep.subr.bf16.mxu1 %v3729_v0 }
 0x490   : > { %3310 = vmatpush3.bf16.msra.mxu1 %v3517_v34 }
 0x491   : > { %3311 = vmatprep.subr.bf16.mxu1 %v3729_v0 }
 0x494   : > { %3312 = vmatpush3.bf16.msra.mxu1 %v3518_v35 }
 0x495   : > { %3317 = vmatprep.subr.bf16.mxu1 %v3729_v0 }
 0x497   : > { %3314 = vmatmul.mubr.bf16.vlgmr.msra.gmra.mrb[16].mxu1 %v3948_v36 }
 0x498   : > { %3319 = vmatprep.mubr.msk.bf16.mxu1 %vm3730_vm0, %v3729_v0 }
 0x49d   : > { %3318 = vmatpush3.bf16.xpose.msra.mxu1 %v4098_v40 }
 0x49e   : > { %3323 = vmatprep.subr.bf16.mxu1 %v3729_v0 }
 0x54a   : > { %v4168_v37 = vpop.f32.mrb[12].mxu1 }
 0x54b   : > { %v3295_v38 = vpop.f32.mrb[13].mxu1 }
 0x54c   : > { %v4170_v39 = vpop.f32.mrb[14].mxu1 }
 0x54d   : > { %v1223_v41 = vpack.c.bf16 %v4170_v39, %v4168_v37  ;;  %v3296_v42 = vpop.f32.mrb[15].mxu1  ;;  %v3523_v39 = vld [vmem:[%s4603_s4 + $0x80] sm:$0xff]  }
 0x56a   : > { %v1327_v43 = vpop.f32.mrb[16].mxu1 }
 0x56b   : > { %v1334_v44 = vsub.f32 0.0, %v1327_v43  ;;  %v3315_v45 = vpop.f32.mrb[17].mxu1  ;;  %v1354_v56 = vmul.f32 %v1327_v43, %v4080_v27 }
 0x56c   : > { %v1330_v46 = vpop.f32.mrb[18].mxu1  ;;  %v964_v45 = vmul.f32 %v4061_v7, %v4080_v27 }
 0x56d   : > { %v1335_v47 = vsub.f32 0.0, %v1330_v46  ;;  %1338 = vrot.lane.b32.xlu0 %v1334_v44, %s4628_s16  ;;  %v3316_v48 = vpop.f32.mrb[19].mxu1  ;;  %v1355_v57 = vmul.f32 %v1330_v46, %v4085_v28 }
 0x56f   : > { %1340 = vrot.lane.b32.xlu1 %v1335_v47, %s4628_s16 }
 0x571   : > { %1348 = vrot.lane.b32.xlu0 %v1330_v46, %s4629_s15  ;;  %v965_v46 = vmul.f32 %v4063_v11, %v4085_v28 }
 0x573   : > { %1346 = vrot.lane.b32.xlu1 %v1327_v43, %s4629_s15 }
 0x5df   : > { %v1339_v40 = vpop.permute.xlu0 %1338 }
 0x5e1   : > { %v1341_v49 = vpop.permute.xlu1 %1340 }
 0x5e3   : > { %v1349_v50 = vpop.permute.xlu0 %1348 }
 0x5e4   : > { %v1353_v51 = vsel %vm721_vm1, %v1341_v49, %v1349_v50 }
 0x5e5   : > { %v1357_v52 = vmul.f32 %v1353_v51, %v4090_v29  ;;  %v1347_v53 = vpop.permute.xlu1 %1346 }
 0x5e6   : > { %v1352_v55 = vsel %vm721_vm1, %v1339_v40, %v1347_v53 }
 0x5e7   : > { %v1356_v59 = vmul.f32 %v1352_v55, %v4074_v25  ;;  %v1359_v60 = vadd.f32 %v1357_v52, %v1355_v57  ;;  %v3519_v52 = vld [vmem:[%s4606_s7] sm:$0xff]  }
 0x5e9   : > { %v1358_v61 = vadd.f32 %v1356_v59, %v1354_v56  ;;  %v3522_v56 = vld [vmem:[%s4606_s7 + $0x18] sm:$0xff]  }
 0x5ea   : > { %3332 = vmatpush3.bf16.msra.mxu0 %v3522_v56 }
 0x5eb   : > { %v1360_v62 = vpack.c.bf16 %v1359_v60, %v1358_v61  ;;  %3345 = vmatprep.subr.bf16.mxu0 %v3729_v0  ;;  %v3524_v61 = vld [vmem:[%s4603_s4 + $0x88] sm:$0xff]  }
 0x5ed   : > { %3320 = vmatmul.mubr.msk.bf16.vlgmr.msra.gmra.mrb[20].mxu1 %vm1104_vm2, %v1360_v62 }
 0x5ee   : > { %3324 = vmatpush3.bf16.msra.mxu1 %v4056_v3  ;;  %3325 = vmatprep.mubr.msk.bf16.mxu1 %vm3730_vm0, %v3729_v0 }
 0x5ef   : > { %3337 = vmatprep.subr.bf16.mxu1 %v3729_v0 }
 0x6c0   : > { %v1398_v63 = vpop.f32.mrb[20].mxu1 }
 0x6c1   : > { %v1405_v1 = vmul.f32 0.17677669, %v1398_v63  ;;  %v3321_v2 = vpop.f32.mrb[21].mxu1 }
 0x6c2   : > { %v1401_v4 = vpop.f32.mrb[22].mxu1  ;;  %v3525_v2 = vld [vmem:[%s4603_s4 + $0x90] sm:$0xff]  }
 0x6c3   : > { %v1406_v5 = vmul.f32 0.17677669, %v1401_v4  ;;  %v3322_v6 = vpop.f32.mrb[23].mxu1  ;;  %v1407_v8 = vadd.f32 %v1405_v1, %v4118_v54 }
 0x6c4   : > { %v3527_v6 = vld [vmem:[%s4603_s4 + $0xa0] sm:$0xff]  }
 0x6c5   : > { %v1409_v9 = vsel %vm721_vm1, %v1407_v8, -inf  ;;  %v1408_v10 = vadd.f32 %v1406_v5, %v4120_v58  ;;  %v3526_v5 = vld [vmem:[%s4603_s4 + $0x98] sm:$0xff]  }
 0x6c6   : > { %1410 = vmax.xlane.f32.xlu1 %v1409_v9  ;;  %v3529_v9 = vld [vmem:[%s4603_s4 + $0xb0] sm:$0xff]  }
 0x6c7   : > { %v1412_v3 = vsel %vm721_vm1, %v1408_v10, -inf }
 0x6c8   : > { %1413 = vmax.xlane.f32.xlu0 %v1412_v3 }
 0x753   : > { %v1411_v12 = vpop.xlane.xlu1 %1410 }
 0x754   : > { %v1415_v14 = vsub.f32 %v1407_v8, %v1411_v12  ;;  %v3528_v8 = vld [vmem:[%s4603_s4 + $0xa8] sm:$0xff]  }
 0x755   : > { %v1414_v15 = vpop.xlane.xlu0 %1413 }
 0x756   : > { %v1417_v16 = vmul.f32 1.442695, %v1415_v14  ;;  %v1416_v17 = vsub.f32 %v1408_v10, %v1414_v15  ;;  %v3530_v10 = vld [vmem:[%s4603_s4 + $0xb8] sm:$0xff]  }
 0x758   : > { %3619 = vpow2.f32 %v1417_v16  ;;  %v1419_v18 = vmul.f32 1.442695, %v1416_v17 }
 0x75a   : > { %3621 = vpow2.f32 %v1419_v18 }
 0x762   : > { %v3620_v19 = vpop.eup %3619 }
 0x763   : > { %v1421_v20 = vsel %vm721_vm1, %v3620_v19, 0.0 }
 0x764   : > { %v3622_v21 = vpop.eup %3621  ;;  %1422 = vadd.xlane.f32.xlu0 %v1421_v20 }
 0x765   : > { %v1424_v22 = vsel %vm721_vm1, %v3622_v21, 0.0 }
 0x766   : > { %1425 = vadd.xlane.f32.xlu1 %v1424_v22 }
 0x777   : > { %950 = vrot.lane.b32.xlu1 %v945_v23, %s4628_s16 }
 0x77a   : > { %948 = vrot.lane.b32.xlu0 %v944_v24, %s4628_s16 }
 0x77b   : > { %956 = vrot.lane.b32.xlu1 %v4061_v7, %s4629_s15  ;;  %v3520_v7 = vld [vmem:[%s4606_s7 + $0x8] sm:$0xff]  }
 0x77e   : > { %958 = vrot.lane.b32.xlu0 %v4063_v11, %s4629_s15 }
 0x7f1   : > { %v1423_v30 = vpop.xlane.xlu0 %1422 }
 0x7f2   : > { %3623 = vrcp.f32 %v1423_v30 }
 0x7f3   : > { %v1426_v31 = vpop.xlane.xlu1 %1425 }
 0x7f4   : > { %3625 = vrcp.f32 %v1426_v31 }
 0x7f5   : > { %v949_v32 = vpop.permute.xlu0 %948 }
 0x7f7   : > { %v951_v33 = vpop.permute.xlu1 %950 }
 0x7f9   : > { %v959_v34 = vpop.permute.xlu0 %958 }
 0x7fa   : > { %v963_v35 = vsel %vm721_vm1, %v951_v33, %v959_v34 }
 0x7fb   : > { %v967_v38 = vmul.f32 %v963_v35, %v4090_v29  ;;  %v957_v42 = vpop.permute.xlu1 %956 }
 0x7fc   : > { %v3624_v43 = vpop.eup %3623  ;;  %v962_v44 = vsel %vm721_vm1, %v949_v32, %v957_v42 }
 0x7fd   : > { %v966_v47 = vmul.f32 %v962_v44, %v4074_v25  ;;  %v1429_v40 = vmul.f32 %v3624_v43, %v3620_v19  ;;  %v969_v50 = vadd.f32 %v967_v38, %v965_v46 }
 0x7fe   : > { %v3626_v48 = vpop.eup %3625 }
 0x7ff   : > { %v1430_v49 = vmul.f32 %v3626_v48, %v3622_v21  ;;  %v968_v51 = vadd.f32 %v966_v47, %v964_v45 }
 0x801   : > { %v1431_v53 = vpack.c.bf16 %v1430_v49, %v1429_v40  ;;  %v970_v55 = vpack.c.bf16 %v969_v50, %v968_v51 }
 0x803   : > { %3326 = vmatmul.mubr.msk.bf16.vlgmr.msra.gmra.mrb[24].mxu1 %vm721_vm1, %v1431_v53  ;;  %v1731_v11 = vsel %vm1104_vm2, %v970_v55, 0 }
 0x804   : > { %3338 = vmatpush3.bf16.msra.mxu1 %v3519_v52  ;;  %3341 = vmatprep.mubr.msk.bf16.mxu1 %vm3730_vm0, %v3729_v0 }
 0x805   : > { %3339 = vmatprep.subr.bf16.mxu1 %v3729_v0 }
 0x808   : > { %3340 = vmatpush3.bf16.msra.mxu1 %v3520_v7 }
 0x809   : > { %3365 = vmatprep.subr.bf16.mxu1 %v3729_v0 }
 0x80b   : > { %3342 = vmatmul.mubr.msk.bf16.vlgmr.msra.gmra.mrb[28].mxu1 %vm1104_vm2, %v1223_v41 }
 0x80c   : > { %3367 = vmatprep.mubr.msk.bf16.mxu1 %vm3730_vm0, %v3729_v0 }
 0x811   : > { %3366 = vmatpush3.bf16.xpose.msra.mxu1 %v1731_v11 }
 0x812   : > { %3371 = vmatprep.subr.bf16.mxu1 %v3729_v0 }
 0x8d6   : > { %v1469_v57 = vpop.f32.mrb[24].mxu1 }
 0x8d7   : > { %v3327_v59 = vpop.f32.mrb[25].mxu1 }
 0x8d8   : > { %v1472_v37 = vpop.f32.mrb[26].mxu1 }
 0x8d9   : > { %v1476_v41 = vpack.c.bf16 %v1472_v37, %v1469_v57  ;;  %v3328_v60 = vpop.f32.mrb[27].mxu1 }
 0x8db   : > { %3334 = vmatmul.mubr.msk.bf16.vlgmr.msra.gmra.mrb[12].mxu0 %vm1104_vm2, %v1476_v41 }
 0x8dc   : > { %3346 = vmatpush3.bf16.msra.mxu0 %v3523_v39  ;;  %3361 = vmatprep.mubr.msk.bf16.mxu0 %vm3730_vm0, %v3729_v0 }
 0x8dd   : > { %3347 = vmatprep.subr.bf16.mxu0 %v3729_v0 }
 0x8de   : > { %v1587_v62 = vpop.f32.mrb[28].mxu1 }
 0x8df   : > { %v3343_v63 = vpop.f32.mrb[29].mxu1 }
 0x8e0   : > { %3348 = vmatpush3.bf16.msra.mxu0 %v3524_v61  ;;  %v1590_v1 = vpop.f32.mrb[30].mxu1 }
 0x8e1   : > { %v3344_v4 = vpop.f32.mrb[31].mxu1  ;;  %3349 = vmatprep.subr.bf16.mxu0 %v3729_v0 }
 0x8e4   : > { %3350 = vmatpush3.bf16.msra.mxu0 %v3525_v2 }
 0x8e5   : > { %3351 = vmatprep.subr.bf16.mxu0 %v3729_v0 }
 0x8e8   : > { %3352 = vmatpush3.bf16.msra.mxu0 %v3526_v5 }
 0x8e9   : > { %3353 = vmatprep.subr.bf16.mxu0 %v3729_v0 }
 0x8ec   : > { %3354 = vmatpush3.bf16.msra.mxu0 %v3527_v6  ;;  %v3531_v6 = vld [vmem:[%s4606_s7 + $0x20] sm:$0xff]  }
 0x8ed   : > { %3355 = vmatprep.subr.bf16.mxu0 %v3729_v0 }
 0x8f0   : > { %3356 = vmatpush3.bf16.msra.mxu0 %v3528_v8 }
 0x8f1   : > { %3357 = vmatprep.subr.bf16.mxu0 %v3729_v0 }
 0x8f4   : > { %3358 = vmatpush3.bf16.msra.mxu0 %v3529_v9  ;;  %v3532_v9 = vld [vmem:[%s4606_s7 + $0x28] sm:$0xff]  }
 0x8f5   : > { %3359 = vmatprep.subr.bf16.mxu0 %v3729_v0 }
 0x8f8   : > { %3360 = vmatpush3.bf16.msra.mxu0 %v3530_v10 }
 0x8f9   : > { %3405 = vmatprep.subr.bf16.mxu0 %v3729_v0 }
 0x8fb   : > { %3362 = vmatmul.mubr.bf16.vlgmr.msra.gmra.mrb[16].mxu0 %v3948_v36 }
 0x8fc   : > { %3407 = vmatprep.mubr.msk.bf16.mxu0 %vm3730_vm0, %v3729_v0 }
 0x901   : > { %3406 = vmatpush3.bf16.xpose.msra.mxu0 %v1731_v11 }
 0x902   : > { %3411 = vmatprep.subr.bf16.mxu0 %v3729_v0 }
 0x9ae   : > { %v1531_v3 = vpop.f32.mrb[12].mxu0 }
 0x9af   : > { %v4277_v12 = vadd.f32 %v1587_v62, %v1531_v3  ;;  %v3335_v14 = vpop.f32.mrb[13].mxu0 }
 0x9b0   : > { %v1534_v15 = vpop.f32.mrb[14].mxu0 }
 0x9b1   : > { %v4279_v16 = vadd.f32 %v1590_v1, %v1534_v15  ;;  %v3336_v17 = vpop.f32.mrb[15].mxu0  ;;  %v3533_v15 = vld [vmem:[%s4603_s4 + $0xc0] sm:$0xff]  }
 0x9ce   : > { %v1693_v18 = vpop.f32.mrb[16].mxu0 }
 0x9cf   : > { %v1700_v19 = vsub.f32 0.0, %v1693_v18  ;;  %v3363_v20 = vpop.f32.mrb[17].mxu0  ;;  %v1720_v35 = vmul.f32 %v1693_v18, %v4080_v27 }
 0x9d0   : > { %v1696_v21 = vpop.f32.mrb[18].mxu0  ;;  %v3535_v20 = vld [vmem:[%s4603_s4 + $0xd0] sm:$0xff]  }
 0x9d1   : > { %v1701_v22 = vsub.f32 0.0, %v1696_v21  ;;  %1704 = vrot.lane.b32.xlu1 %v1700_v19, %s4628_s16  ;;  %v3364_v23 = vpop.f32.mrb[19].mxu0  ;;  %v1721_v38 = vmul.f32 %v1696_v21, %v4085_v28  ;;  %v3534_v19 = vld [vmem:[%s4603_s4 + $0xc8] sm:$0xff]  }
 0x9d2   : > { %v3538_v23 = vld [vmem:[%s4603_s4 + $0xe8] sm:$0xff]  }
 0x9d3   : > { %1706 = vrot.lane.b32.xlu0 %v1701_v22, %s4628_s16  ;;  %v3537_v22 = vld [vmem:[%s4603_s4 + $0xe0] sm:$0xff]  }
 0x9d5   : > { %1712 = vrot.lane.b32.xlu1 %v1693_v18, %s4629_s15 }
 0x9d7   : > { %1714 = vrot.lane.b32.xlu0 %v1696_v21, %s4629_s15  ;;  %v3536_v21 = vld [vmem:[%s4603_s4 + $0xd8] sm:$0xff]  }
 0xa43   : > { %v1705_v24 = vpop.permute.xlu1 %1704 }
 0xa45   : > { %v1707_v26 = vpop.permute.xlu0 %1706 }
 0xa47   : > { %v1713_v30 = vpop.permute.xlu1 %1712 }
 0xa48   : > { %v1718_v31 = vsel %vm721_vm1, %v1705_v24, %v1713_v30  ;;  %v3539_v24 = vld [vmem:[%s4603_s4 + $0xf0] sm:$0xff]  }
 0xa49   : > { %v1722_v32 = vmul.f32 %v1718_v31, %v4074_v25  ;;  %v1715_v33 = vpop.permute.xlu0 %1714 }
 0xa4a   : > { %v1719_v34 = vsel %vm721_vm1, %v1707_v26, %v1715_v33  ;;  %v3540_v26 = vld [vmem:[%s4603_s4 + $0xf8] sm:$0xff]  }
 0xa4b   : > { %v1723_v42 = vmul.f32 %v1719_v34, %v4090_v29  ;;  %v1724_v43 = vadd.f32 %v1722_v32, %v1720_v35 }
 0xa4d   : > { %v1725_v44 = vadd.f32 %v1723_v42, %v1721_v38 }
 0xa4f   : > { %v1726_v45 = vpack.c.bf16 %v1725_v44, %v1724_v43 }
 0xa51   : > { %3368 = vmatmul.mubr.msk.bf16.vlgmr.msra.gmra.mrb[32].mxu1 %vm1104_vm2, %v1726_v45 }
 0xa52   : > { %3372 = vmatpush3.bf16.msra.mxu1 %v4065_v13  ;;  %3373 = vmatprep.mubr.msk.bf16.mxu1 %vm3730_vm0, %v3729_v0 }
 0xa53   : > { %3377 = vmatprep.subr.bf16.mxu1 %v3729_v0 }
 0xb24   : > { %v1767_v46 = vpop.f32.mrb[32].mxu1 }
 0xb25   : > { %v1774_v47 = vmul.f32 0.17677669, %v1767_v46  ;;  %v3369_v48 = vpop.f32.mrb[33].mxu1 }
 0xb26   : > { %v1770_v40 = vpop.f32.mrb[34].mxu1 }
 0xb27   : > { %v1775_v49 = vmul.f32 0.17677669, %v1770_v40  ;;  %v3370_v50 = vpop.f32.mrb[35].mxu1  ;;  %v1776_v51 = vadd.f32 %v1774_v47, %v4118_v54 }
 0xb29   : > { %v1778_v52 = vsel %vm721_vm1, %v1776_v51, -inf  ;;  %v1777_v53 = vadd.f32 %v1775_v49, %v4120_v58 }
 0xb2a   : > { %1779 = vmax.xlane.f32.xlu1 %v1778_v52 }
 0xb2b   : > { %v1781_v55 = vsel %vm721_vm1, %v1777_v53, -inf }
 0xb2c   : > { %1782 = vmax.xlane.f32.xlu0 %v1781_v55 }
 0xbb7   : > { %v1780_v7 = vpop.xlane.xlu1 %1779 }
 0xbb8   : > { %v1784_v11 = vsub.f32 %v1776_v51, %v1780_v7 }
 0xbb9   : > { %v1783_v56 = vpop.xlane.xlu0 %1782 }
 0xbba   : > { %v1786_v57 = vmul.f32 1.442695, %v1784_v11  ;;  %v1785_v59 = vsub.f32 %v1777_v53, %v1783_v56 }
 0xbbc   : > { %3627 = vpow2.f32 %v1786_v57  ;;  %v1788_v37 = vmul.f32 1.442695, %v1785_v59 }
 0xbbe   : > { %3629 = vpow2.f32 %v1788_v37 }
 0xbc6   : > { %v3628_v39 = vpop.eup %3627 }
 0xbc7   : > { %v1790_v41 = vsel %vm721_vm1, %v3628_v39, 0.0 }
 0xbc8   : > { %v3630_v60 = vpop.eup %3629  ;;  %1791 = vadd.xlane.f32.xlu0 %v1790_v41 }
 0xbc9   : > { %v1793_v61 = vsel %vm721_vm1, %v3630_v60, 0.0 }
 0xbca   : > { %1794 = vadd.xlane.f32.xlu1 %v1793_v61 }
 0xc55   : > { %v1792_v62 = vpop.xlane.xlu0 %1791 }
 0xc56   : > { %3631 = vrcp.f32 %v1792_v62 }
 0xc57   : > { %v1795_v63 = vpop.xlane.xlu1 %1794 }
 0xc58   : > { %3633 = vrcp.f32 %v1795_v63 }
 0xc60   : > { %v3632_v1 = vpop.eup %3631 }
 0xc61   : > { %v1798_v4 = vmul.f32 %v3632_v1, %v3628_v39 }
 0xc62   : > { %v3634_v2 = vpop.eup %3633 }
 0xc63   : > { %v1799_v5 = vmul.f32 %v3634_v2, %v3630_v60 }
 0xc65   : > { %v1800_v8 = vpack.c.bf16 %v1799_v5, %v1798_v4 }
 0xc67   : > { %3374 = vmatmul.mubr.msk.bf16.vlgmr.msra.gmra.mrb[36].mxu1 %vm721_vm1, %v1800_v8 }
 0xc68   : > { %3378 = vmatpush3.bf16.msra.mxu1 %v3531_v6  ;;  %3381 = vmatprep.mubr.msk.bf16.mxu1 %vm3730_vm0, %v3729_v0 }
 0xc69   : > { %3379 = vmatprep.subr.bf16.mxu1 %v3729_v0 }
 0xc6c   : > { %3380 = vmatpush3.bf16.msra.mxu1 %v3532_v9 }
 0xc6d   : > { %3385 = vmatprep.subr.bf16.mxu1 %v3729_v0 }
 0xd3a   : > { %v1838_v10 = vpop.f32.mrb[36].mxu1 }
 0xd3b   : > { %v3375_v3 = vpop.f32.mrb[37].mxu1 }
 0xd3c   : > { %v1841_v14 = vpop.f32.mrb[38].mxu1  ;;  %v3541_v3 = vld [vmem:[%s4606_s7 + $0x30] sm:$0xff]  }
 0xd3d   : > { %v1845_v17 = vpack.c.bf16 %v1841_v14, %v1838_v10  ;;  %v3376_v18 = vpop.f32.mrb[39].mxu1 }
 0xd3f   : > { %3382 = vmatmul.mubr.msk.bf16.vlgmr.msra.gmra.mrb[40].mxu1 %vm1104_vm2, %v1845_v17 }
 0xd40   : > { %3386 = vmatpush3.bf16.msra.mxu1 %v3533_v15  ;;  %3401 = vmatprep.mubr.msk.bf16.mxu1 %vm3730_vm0, %v3729_v0  ;;  %v3542_v15 = vld [vmem:[%s4606_s7 + $0x38] sm:$0xff]  }
 0xd41   : > { %3387 = vmatprep.subr.bf16.mxu1 %v3729_v0 }
 0xd44   : > { %3388 = vmatpush3.bf16.msra.mxu1 %v3534_v19 }
 0xd45   : > { %3389 = vmatprep.subr.bf16.mxu1 %v3729_v0 }
 0xd48   : > { %3390 = vmatpush3.bf16.msra.mxu1 %v3535_v20 }
 0xd49   : > { %3391 = vmatprep.subr.bf16.mxu1 %v3729_v0 }
 0xd4c   : > { %3392 = vmatpush3.bf16.msra.mxu1 %v3536_v21 }
 0xd4d   : > { %3393 = vmatprep.subr.bf16.mxu1 %v3729_v0 }
 0xd50   : > { %3394 = vmatpush3.bf16.msra.mxu1 %v3537_v22  ;;  %v3543_v22 = vld [vmem:[%s4607_s8] ss:$8 sps:$4 sm:$0xff]  }
 0xd51   : > { %3395 = vmatprep.subr.bf16.mxu1 %v3729_v0 }
 0xd54   : > { %3396 = vmatpush3.bf16.msra.mxu1 %v3538_v23  ;;  %v3546_v23 = vld [vmem:[%s4608_s9] ss:$8 sps:$4 sm:$0xff]  }
 0xd55   : > { %3397 = vmatprep.subr.bf16.mxu1 %v3729_v0 }
 0xd58   : > { %3398 = vmatpush3.bf16.msra.mxu1 %v3539_v24  ;;  %v3548_v24 = vld [vmem:[%s4608_s9 + $0x4] ss:$8 sps:$4 sm:$0xff]  }
 0xd59   : > { %3399 = vmatprep.subr.bf16.mxu1 %v3729_v0 }
 0xd5c   : > { %3400 = vmatpush3.bf16.msra.mxu1 %v3540_v26  ;;  %v3551_v26 = vld [vmem:[%s4607_s8 + $0x14] ss:$8 sps:$4 sm:$0xff]  }
 0xd5d   : > { %2482 = vmatprep.subr.bf16.mxu1 %v3548_v24  ;;  %v3599_v24 = vld [vmem:[%s4609_s10 + $0x60] sm:$0xff]  }
 0xd5f   : > { %3402 = vmatmul.mubr.bf16.vlgmr.msra.gmra.mrb[44].mxu1 %v3948_v36 }
 0xd60   : > { %2483 = vmatpush1.bf16.msra.mxu1 %v3546_v23  ;;  %v3598_v23 = vld [vmem:[%s4609_s10 + $0x18] sm:$0xff]  }
 0xe12   : > { %v1900_v30 = vpop.f32.mrb[40].mxu1 }
 0xe13   : > { %v4349_v31 = vadd.f32 %v1900_v30, %v4277_v12  ;;  %v3383_v32 = vpop.f32.mrb[41].mxu1  ;;  %v3554_v30 = vld [vmem:[%s4608_s9 + $0x14] ss:$8 sps:$4 sm:$0xff]  }
 0xe14   : > { %v1903_v33 = vpop.f32.mrb[42].mxu1  ;;  %v3549_v32 = vld [vmem:[%s4607_s8 + $0x10] ss:$8 sps:$4 sm:$0xff]   ;;  %2484 = vmatprep.subr.bf16.mxu1 %v3554_v30  ;;  %v3601_v30 = vld [vmem:[%s4609_s10 + $0x68] sm:$0xff]  }
 0xe15   : > { %v4352_v34 = vadd.f32 %v1903_v33, %v4279_v16  ;;  %v3384_v35 = vpop.f32.mrb[43].mxu1  ;;  %v3552_v33 = vld [vmem:[%s4608_s9 + $0x10] ss:$8 sps:$4 sm:$0xff]  }
 0xe16   : > { %v3557_v35 = vld [vmem:[%s4607_s8 + $0x24] ss:$8 sps:$4 sm:$0xff]   ;;  %2485 = vmatpush1.bf16.msra.mxu1 %v3552_v33  ;;  %v3603_v33 = vld [vmem:[%s4609_s10 + $0x70] sm:$0xff]  }
 0xe32   : > { %v2008_v38 = vpop.f32.mrb[44].mxu1 }
 0xe33   : > { %v2015_v42 = vsub.f32 0.0, %v2008_v38  ;;  %v3403_v43 = vpop.f32.mrb[45].mxu1  ;;  %v2035_v50 = vmul.f32 %v2008_v38, %v4080_v27 }
 0xe34   : > { %v2011_v44 = vpop.f32.mrb[46].mxu1  ;;  %v3558_v43 = vld [vmem:[%s4608_s9 + $0x20] ss:$8 sps:$4 sm:$0xff]  }
 0xe35   : > { %v2016_v45 = vsub.f32 0.0, %v2011_v44  ;;  %2019 = vrot.lane.b32.xlu0 %v2015_v42, %s4628_s16  ;;  %v3404_v46 = vpop.f32.mrb[47].mxu1  ;;  %v2036_v51 = vmul.f32 %v2011_v44, %v4085_v28  ;;  %v3555_v42 = vld [vmem:[%s4607_s8 + $0x20] ss:$8 sps:$4 sm:$0xff]  }
 0xe37   : > { %2021 = vrot.lane.b32.xlu1 %v2016_v45, %s4628_s16  ;;  %s2824_s16 = sshll.u32 %s446_s20, 4 }
 0xe38   : > { %s448_s0 = scalar_lea.vmem [#allocation2], %s2824_s16 }
 0xe39   : > { %2029 = vrot.lane.b32.xlu0 %v2011_v44, %s4629_s15 }
 0xe3b   : > { %2027 = vrot.lane.b32.xlu1 %v2008_v38, %s4629_s15  ;;  %v3560_v38 = vld [vmem:[%s4608_s9 + $0x24] ss:$8 sps:$4 sm:$0xff]  }
 0xe3c   : > { %2486 = vmatprep.subr.bf16.mxu1 %v3560_v38  ;;  %v3605_v38 = vld [vmem:[%s4609_s10 + $0x78] sm:$0xff]  }
 0xe3d   : > { %2487 = vmatpush1.bf16.msra.mxu1 %v3558_v43 }
 0xea7   : > { %v2020_v36 = vpop.permute.xlu0 %2019 }
 0xea9   : > { %v2022_v12 = vpop.permute.xlu1 %2021 }
 0xeab   : > { %v2030_v47 = vpop.permute.xlu0 %2029 }
 0xeac   : > { %v2034_v16 = vsel %vm721_vm1, %v2022_v12, %v2030_v47  ;;  %v3663_v12 = vld [vmem:[%s3880_s23] sm:$0xff] }
 0xead   : > { %v2038_v48 = vmul.f32 %v2034_v16, %v4090_v29  ;;  %v2028_v40 = vpop.permute.xlu1 %2027 }
 0xeae   : > { %v2033_v49 = vsel %vm721_vm1, %v2020_v36, %v2028_v40  ;;  %v3664_v40 = vld [vmem:[%s3880_s23 + $0x8] sm:$0xff]  ;;  %s2746_s23 = sshll.u32 %s448_s0, 4  ;;  %s4550_s23 = int_to_ptr.vmem [resolvable:$true] %s2746_s23 }
 0xeaf   : > { %v2037_v52 = vmul.f32 %v2033_v49, %v4074_v25  ;;  %v2040_v53 = vadd.f32 %v2038_v48, %v2036_v51  ;;  %s3665_s29 = scalar_lea.vmem %s4550_s23, 256  ;;  %p3672_p0 = scmp.lt.s32.totalorder %s4550_s23, %s3670_s30 }
 0xeb0   : > { %p3666_p11 = scmp.ne.s32.totalorder %s4550_s23, %s3665_s29  ;;  %p3673_p1 = scmp.lt.s32.totalorder %s3671_s22, %s3665_s29 }
 0xeb1   : > { %v2039_v55 = vadd.f32 %v2037_v52, %v2035_v50  ;;  %v3561_v52 = vld [vmem:[%s4607_s8 + $0x30] ss:$8 sps:$4 sm:$0xff]  }
 0xeb2   : > { %p3667_p12 = pnand %p3666_p11, %p3845_p5  ;;  %p3674_p2 = por %p3673_p1, %p3672_p0 }
 0xeb3   : > { %v2041_v7 = vpack.c.bf16 %v2040_v53, %v2039_v55  ;;  %v3564_v53 = vld [vmem:[%s4608_s9 + $0x30] ss:$8 sps:$4 sm:$0xff]   ;;  %v3567_v55 = vld [vmem:[%s4607_s8 + $0x40] ss:$8 sps:$4 sm:$0xff]  }
 0xeb4   : > { %p3668_p13 = pneg %p3667_p12 }
 0xeb5   : > { %3408 = vmatmul.mubr.msk.bf16.vlgmr.msra.gmra.mrb[20].mxu0 %vm1104_vm2, %v2041_v7  ;;  %v3569_v7 = vld [vmem:[%s4607_s8 + $0x44] ss:$8 sps:$4 sm:$0xff]  }
 0xeb6   : > { %3412 = vmatpush3.bf16.msra.mxu0 %v4065_v13  ;;  %3413 = vmatprep.mubr.msk.bf16.mxu0 %vm3730_vm0, %v3729_v0  ;;  %p3675_p3 = pnand %p3674_p2, %p3668_p13 }
 0xeb7   : > { %3417 = vmatprep.subr.bf16.mxu0 %v3729_v0 }
 0xf88   : > { %v2079_v29 = vpop.f32.mrb[20].mxu0 }
 0xf89   : > { %v2086_v11 = vmul.f32 0.17677669, %v2079_v29  ;;  %v3409_v56 = vpop.f32.mrb[21].mxu0  ;;  %v3570_v29 = vld [vmem:[%s4608_s9 + $0x40] ss:$8 sps:$4 sm:$0xff]  }
 0xf8a   : > { %v2082_v27 = vpop.f32.mrb[22].mxu0  ;;  %v3575_v56 = vld [vmem:[%s4607_s8 + $0x54] ss:$8 sps:$4 sm:$0xff]  }
 0xf8b   : > { %v2087_v57 = vmul.f32 0.17677669, %v2082_v27  ;;  %v3410_v28 = vpop.f32.mrb[23].mxu0  ;;  %v2088_v25 = vadd.f32 %v2086_v11, %v4118_v54  ;;  %v3572_v11 = vld [vmem:[%s4608_s9 + $0x44] ss:$8 sps:$4 sm:$0xff]  }
 0xf8c   : > { %v3578_v27 = vld [vmem:[%s4608_s9 + $0x54] ss:$8 sps:$4 sm:$0xff]   ;;  %v3576_v28 = vld [vmem:[%s4608_s9 + $0x50] ss:$8 sps:$4 sm:$0xff]  }
 0xf8d   : > { %v2090_v59 = vsel %vm721_vm1, %v2088_v25, -inf  ;;  %v2089_v37 = vadd.f32 %v2087_v57, %v4120_v58  ;;  %v3573_v57 = vld [vmem:[%s4607_s8 + $0x50] ss:$8 sps:$4 sm:$0xff]  }
 0xf8e   : > { %2091 = vmax.xlane.f32.xlu1 %v2090_v59  ;;  %v3584_v59 = vld [vmem:[%s4608_s9 + $0x64] ss:$8 sps:$4 sm:$0xff]  }
 0xf8f   : > { %v2093_v13 = vsel %vm721_vm1, %v2089_v37, -inf }
 0xf90   : > { %2094 = vmax.xlane.f32.xlu0 %v2093_v13  ;;  %v3579_v13 = vld [vmem:[%s4607_s8 + $0x60] ss:$8 sps:$4 sm:$0xff]  }
0x101b   : > { %v2092_v39 = vpop.xlane.xlu1 %2091 }
0x101c   : > { %v2096_v41 = vsub.f32 %v2088_v25, %v2092_v39  ;;  %v3581_v25 = vld [vmem:[%s4607_s8 + $0x64] ss:$8 sps:$4 sm:$0xff]   ;;  %v3582_v39 = vld [vmem:[%s4608_s9 + $0x60] ss:$8 sps:$4 sm:$0xff]  }
0x101d   : > { %v2095_v60 = vpop.xlane.xlu0 %2094 }
0x101e   : > { %v2098_v61 = vmul.f32 1.442695, %v2096_v41  ;;  %v2097_v62 = vsub.f32 %v2089_v37, %v2095_v60  ;;  %v3733_v37 = vmov 0   ;;  %v3587_v41 = vld [vmem:[%s4607_s8 + $0x74] ss:$8 sps:$4 sm:$0xff]  }
0x101f   : > { %2514 = vmatprep.mubr.bf16.mxu1 %v3733_v37  ;;  %v3590_v60 = vld [vmem:[%s4608_s9 + $0x74] ss:$8 sps:$4 sm:$0xff]  }
0x1020   : > { %3635 = vpow2.f32 %v2098_v61  ;;  %v2100_v63 = vmul.f32 1.442695, %v2097_v62  ;;  %v3585_v61 = vld [vmem:[%s4607_s8 + $0x70] ss:$8 sps:$4 sm:$0xff]  }
0x1021   : > { %v3588_v62 = vld [vmem:[%s4608_s9 + $0x70] ss:$8 sps:$4 sm:$0xff]  }
0x1022   : > { %3637 = vpow2.f32 %v2100_v63 }
0x102a   : > { %v3636_v1 = vpop.eup %3635 }
0x102b   : > { %v2102_v2 = vsel %vm721_vm1, %v3636_v1, 0.0 }
0x102c   : > { %v3638_v54 = vpop.eup %3637  ;;  %2103 = vadd.xlane.f32.xlu0 %v2102_v2 }
0x102d   : > { %v2105_v4 = vsel %vm721_vm1, %v3638_v54, 0.0 }
0x102e   : > { %2106 = vadd.xlane.f32.xlu1 %v2105_v4 }
0x10b9   : > { %v2104_v58 = vpop.xlane.xlu0 %2103 }
0x10ba   : > { %3639 = vrcp.f32 %v2104_v58 }
0x10bb   : > { %v2107_v5 = vpop.xlane.xlu1 %2106 }
0x10bc   : > { %3641 = vrcp.f32 %v2107_v5 }
0x10c4   : > { %v3640_v6 = vpop.eup %3639 }
0x10c5   : > { %v2110_v9 = vmul.f32 %v3640_v6, %v3636_v1 }
0x10c6   : > { %v3642_v8 = vpop.eup %3641 }
0x10c7   : > { %v2111_v10 = vmul.f32 %v3642_v8, %v3638_v54 }
0x10c9   : > { %v2112_v14 = vpack.c.bf16 %v2111_v10, %v2110_v9  ;;  %v3006_v9 = vld [vmem:[%s4611_s12] ss:$0 sm:$0xff] }
0x10cb   : > { %3414 = vmatmul.mubr.msk.bf16.vlgmr.msra.gmra.mrb[24].mxu0 %vm721_vm1, %v2112_v14 }
0x10cc   : > { %3418 = vmatpush3.bf16.msra.mxu0 %v3541_v3  ;;  %3421 = vmatprep.mubr.msk.bf16.mxu0 %vm3730_vm0, %v3729_v0 }
0x10cd   : > { %3419 = vmatprep.subr.bf16.mxu0 %v3729_v0  ;;  %v3545_v0 = vld [vmem:[%s4607_s8 + $0x4] ss:$8 sps:$4 sm:$0xff]  }
0x10d0   : > { %3420 = vmatpush3.bf16.msra.mxu0 %v3542_v15 }
0x10d1   : > { %2343 = vmatprep.subr.bf16.mxu0 %v3545_v0  ;;  %v3597_v0 = vld [vmem:[%s4609_s10 + $0x58] sm:$0xff]  }
0x119e   : > { %v2150_v17 = vpop.f32.mrb[24].mxu0 }
0x119f   : > { %v3415_v18 = vpop.f32.mrb[25].mxu0 }
0x11a0   : > { %v2153_v19 = vpop.f32.mrb[26].mxu0  ;;  %v3592_v18 = vld [vmem:[%s4609_s10] sm:$0xff]  }
0x11a1   : > { %v2157_v20 = vpack.c.bf16 %v2153_v19, %v2150_v17  ;;  %v3416_v21 = vpop.f32.mrb[27].mxu0  ;;  %v3591_v17 = vld [vmem:[%s4609_s10 + $0x40] sm:$0xff]   ;;  %v3593_v19 = vld [vmem:[%s4609_s10 + $0x48] sm:$0xff]  }
0x11a2   : > { %v3595_v21 = vld [vmem:[%s4609_s10 + $0x50] sm:$0xff]  }
0x11a3   : > { %3422 = vmatmul.mubr.msk.bf16.vlgmr.msra.gmra.mrb[28].mxu0 %vm1104_vm2, %v2157_v20  ;;  %v3594_v20 = vld [vmem:[%s4609_s10 + $0x8] sm:$0xff]  }
0x11a4   : > { %2344 = vmatpush1.bf16.msra.mxu0 %v3543_v22  ;;  %2375 = vmatprep.mubr.bf16.mxu0 %v3733_v37  ;;  %v3596_v22 = vld [vmem:[%s4609_s10 + $0x10] sm:$0xff]  }
0x11a5   : > { %2345 = vmatprep.subr.bf16.mxu0 %v3551_v26  ;;  %v3600_v26 = vld [vmem:[%s4609_s10 + $0x20] sm:$0xff]  }
0x11a8   : > { %2346 = vmatpush1.bf16.msra.mxu0 %v3549_v32  ;;  %v3602_v32 = vld [vmem:[%s4609_s10 + $0x28] sm:$0xff]  }
0x11a9   : > { %2347 = vmatprep.subr.bf16.mxu0 %v3557_v35  ;;  %v3604_v35 = vld [vmem:[%s4609_s10 + $0x30] sm:$0xff]  }
0x11ac   : > { %2348 = vmatpush1.bf16.msra.mxu0 %v3555_v42  ;;  %v3606_v42 = vld [vmem:[%s4609_s10 + $0x38] sm:$0xff]  }
0x1276   : > { %v2212_v44 = vpop.f32.mrb[28].mxu0 }
0x1277   : > { %v2219_v45 = vadd.f32 %v2212_v44, %v4349_v31  ;;  %v3423_v46 = vpop.f32.mrb[29].mxu0  ;;  %v3563_v31 = vld [vmem:[%s4607_s8 + $0x34] ss:$8 sps:$4 sm:$0xff]  }
0x1278   : > { %v2215_v36 = vpop.f32.mrb[30].mxu0  ;;  %2349 = vmatprep.subr.bf16.mxu0 %v3563_v31 }
0x1279   : > { %v4424_v47 = vadd.f32 %v3663_v12, %v2219_v45  ;;  %v2220_v16 = vadd.f32 %v2215_v36, %v4352_v34  ;;  %v3424_v48 = vpop.f32.mrb[31].mxu0  ;;  %v3566_v34 = vld [vmem:[%s4608_s9 + $0x34] ss:$8 sps:$4 sm:$0xff]   ;;  %2350 = vmatpush1.bf16.msra.mxu0 %v3561_v52 }
0x127a   : > { %2488 = vmatprep.subr.bf16.mxu1 %v3566_v34  ;;  %2351 = vmatprep.subr.bf16.mxu0 %v3569_v7 }
0x127b   : > { %v4428_v49 = vadd.f32 %v3664_v40, %v2220_v16  ;;  %v2224_v50 = vmul.f32 %v4424_v47, %v4424_v47  ;;  %2489 = vmatpush1.bf16.msra.mxu1 %v3564_v53 }
0x127c   : > { %2490 = vmatprep.subr.bf16.mxu1 %v3572_v11 }
0x127d   : > { %2226 = vadd.xlane.f32.xlu0 %v2224_v50  ;;  %v2225_v51 = vmul.f32 %v4428_v49, %v4428_v49  ;;  %2352 = vmatpush1.bf16.msra.mxu0 %v3567_v55 }
0x127e   : > { %2353 = vmatprep.subr.bf16.mxu0 %v3575_v56 }
0x127f   : > { %2228 = vadd.xlane.f32.xlu1 %v2225_v51  ;;  %2491 = vmatpush1.bf16.msra.mxu1 %v3570_v29 }
0x1280   : > { %2492 = vmatprep.subr.bf16.mxu1 %v3578_v27 }
0x1281   : > { %2354 = vmatpush1.bf16.msra.mxu0 %v3573_v57 }
0x1282   : > { %2355 = vmatprep.subr.bf16.mxu0 %v3581_v25 }
0x1283   : > { %2493 = vmatpush1.bf16.msra.mxu1 %v3576_v28 }
0x1284   : > { %2494 = vmatprep.subr.bf16.mxu1 %v3584_v59 }
0x1285   : > { %2356 = vmatpush1.bf16.msra.mxu0 %v3579_v13 }
0x1286   : > { %2357 = vmatprep.subr.bf16.mxu0 %v3587_v41 }
0x1287   : > { %2495 = vmatpush1.bf16.msra.mxu1 %v3582_v39 }
0x1288   : > { %2496 = vmatprep.subr.bf16.mxu1 %v3590_v60 }
0x1289   : > { %2358 = vmatpush1.bf16.msra.mxu0 %v3585_v61 }
0x128a   : > { %3163 = vmatprep.subr.bf16.mxu0 %v3591_v17 }
0x128b   : > { %2497 = vmatpush1.bf16.msra.mxu1 %v3588_v62 }
0x130a   : > { %v2227_v63 = vpop.xlane.xlu0 %2226 }
0x130b   : > { %v2230_v1 = vmul.f32 0.0078125, %v2227_v63 }
0x130c   : > { %v2229_v2 = vpop.xlane.xlu1 %2228 }
0x130d   : > { %v2232_v54 = vadd.f32 1e-06, %v2230_v1  ;;  %v2231_v4 = vmul.f32 0.0078125, %v2229_v2 }
0x130f   : > { %3643 = vrsqrt.f32 %v2232_v54  ;;  %v2233_v58 = vadd.f32 1e-06, %v2231_v4 }
0x1311   : > { %3645 = vrsqrt.f32 %v2233_v58 }
0x1319   : > { %v3644_v5 = vpop.eup %3643 }
0x131a   : > { %v2236_v6 = vmul.f32 %v3644_v5, %v4424_v47 }
0x131b   : > { %v3646_v8 = vpop.eup %3645 }
0x131c   : > { %v2237_v10 = vmul.f32 %v3646_v8, %v4428_v49  ;;  %v2244_v3 = vmul.f32 %v3006_v9, %v2236_v6 }
0x131e   : > { %v2245_v14 = vmul.f32 %v3006_v9, %v2237_v10 }
0x1320   : > { %v2246_v15 = vpack.c.bf16 %v2245_v14, %v2244_v3 }
0x1322   : > { %2376 = vmatmul.mubr.bf16.vlgmr.msra.gmra.mrb[32].mxu0 %v2246_v15  ;;  %2515 = vmatmul.mubr.bf16.vlgmr.msra.gmra.mrb[48].mxu1 %v2246_v15 }
0x1323   : > { %3164 = vmatpush3.bf16.msra.mxu0 %v3592_v18 }
0x1324   : > { %3165 = vmatprep.subr.bf16.mxu0 %v3593_v19 }
0x1327   : > { %3166 = vmatpush3.bf16.msra.mxu0 %v3594_v20 }
0x1328   : > { %3167 = vmatprep.subr.bf16.mxu0 %v3595_v21 }
0x132b   : > { %3168 = vmatpush3.bf16.msra.mxu0 %v3596_v22 }
0x132c   : > { %3169 = vmatprep.subr.bf16.mxu0 %v3597_v0 }
0x132f   : > { %3170 = vmatpush3.bf16.msra.mxu0 %v3598_v23 }
0x1330   : > { %3171 = vmatprep.subr.bf16.mxu0 %v3599_v24 }
0x1333   : > { %3172 = vmatpush3.bf16.msra.mxu0 %v3600_v26 }
0x1334   : > { %3173 = vmatprep.subr.bf16.mxu0 %v3601_v30 }
0x1337   : > { %3174 = vmatpush3.bf16.msra.mxu0 %v3602_v32 }
0x1338   : > { %3175 = vmatprep.subr.bf16.mxu0 %v3603_v33 }
0x133b   : > { %3176 = vmatpush3.bf16.msra.mxu0 %v3604_v35 }
0x133c   : > { %3177 = vmatprep.subr.bf16.mxu0 %v3605_v38 }
0x133f   : > { %3178 = vmatpush3.bf16.msra.mxu0 %v3606_v42 }
0x13f5   : > { %v2377_v43 = vpop.f32.mrb[32].mxu0  ;;  %v2516_v44 = vpop.f32.mrb[48].mxu1 }
0x13f6   : > { %v2525_v45 = vsub.f32 0.0, %v2377_v43  ;;  %v2379_v46 = vpop.f32.mrb[33].mxu0  ;;  %v2518_v36 = vpop.f32.mrb[49].mxu1 }
0x13f7   : > { %v2526_v12 = vsub.f32 0.0, %v2379_v46  ;;  %v2381_v16 = vpop.f32.mrb[34].mxu0  ;;  %v2520_v48 = vpop.f32.mrb[50].mxu1 }
0x13f8   : > { %v2529_v40 = vmul.f32 1.442695, %v2525_v45  ;;  %v2527_v50 = vsub.f32 0.0, %v2381_v16  ;;  %v2383_v51 = vpop.f32.mrb[35].mxu0  ;;  %v2522_v31 = vpop.f32.mrb[51].mxu1 }
0x13f9   : > { %v2531_v34 = vmul.f32 1.442695, %v2526_v12  ;;  %v2528_v52 = vsub.f32 0.0, %v2383_v51 }
0x13fa   : > { %3647 = vpow2.f32 %v2529_v40  ;;  %v2533_v53 = vmul.f32 1.442695, %v2527_v50 }
0x13fb   : > { %3649 = vpow2.f32 %v2531_v34  ;;  %v2535_v55 = vmul.f32 1.442695, %v2528_v52 }
0x13fc   : > { %3651 = vpow2.f32 %v2533_v53 }
0x13fd   : > { %3653 = vpow2.f32 %v2535_v55 }
0x1404   : > { %v3648_v7 = vpop.eup %3647 }
0x1405   : > { %v3650_v29 = vpop.eup %3649  ;;  %v2537_v11 = vadd.f32 1.0, %v3648_v7 }
0x1406   : > { %v3652_v56 = vpop.eup %3651  ;;  %v2538_v27 = vadd.f32 1.0, %v3650_v29 }
0x1407   : > { %v3654_v57 = vpop.eup %3653  ;;  %3655 = vrcp.f32 %v2537_v11  ;;  %v2539_v28 = vadd.f32 1.0, %v3652_v56 }
0x1408   : > { %3657 = vrcp.f32 %v2538_v27  ;;  %v2540_v25 = vadd.f32 1.0, %v3654_v57 }
0x1409   : > { %3659 = vrcp.f32 %v2539_v28 }
0x140a   : > { %3661 = vrcp.f32 %v2540_v25 }
0x1411   : > { %v3656_v59 = vpop.eup %3655 }
0x1412   : > { %v3658_v37 = vpop.eup %3657  ;;  %v2549_v13 = vmul.f32 %v3656_v59, %v2377_v43 }
0x1413   : > { %v3660_v39 = vpop.eup %3659  ;;  %v2550_v41 = vmul.f32 %v3658_v37, %v2379_v46 }
0x1414   : > { %v3662_v60 = vpop.eup %3661  ;;  %v2553_v61 = vmul.f32 %v2549_v13, %v2516_v44  ;;  %v2551_v62 = vmul.f32 %v3660_v39, %v2381_v16 }
0x1415   : > { %v2554_v63 = vmul.f32 %v2550_v41, %v2518_v36  ;;  %v2552_v1 = vmul.f32 %v3662_v60, %v2383_v51 }
0x1416   : > { %v2555_v2 = vmul.f32 %v2551_v62, %v2520_v48 }
0x1417   : > { %v2556_v54 = vmul.f32 %v2552_v1, %v2522_v31 }
0x1418   : > { %v2557_v4 = vpack.c.bf16 %v2555_v2, %v2553_v61 }
0x1419   : > { %v2558_v58 = vpack.c.bf16 %v2556_v54, %v2554_v63 }
0x141b   : > { %2719 = vmatprep.mubr.bf16.mxu0 %v2558_v58 }
0x141c   : > { %2720 = vmatmul.mubr.bf16.vlgmr.msra.gmra.mrb[36].mxu0 %v2557_v4 }
0x14ef   : > { %v3179_v5 = vpop.f32.mrb[36].mxu0 }
0x14f0   : > { %v3180_v6 = vpop.f32.mrb[37].mxu0 }
0x14f1   : > { %v3181_v8 = vadd.f32 %v3180_v6, %v3179_v5  ;;  %v3182_v9 = vpop.f32.mrb[38].mxu0 }
0x14f2   : > { %v3183_v10 = vpop.f32.mrb[39].mxu0 }
0x14f3   : > { %v2728_v3 = vadd.f32 %v3181_v8, %v4424_v47  ;;  %v3184_v14 = vadd.f32 %v3183_v10, %v3182_v9 }
0x14f5   : > { %2730 = vst [vmem:[%s448_s0] sm:$0xff] %v2728_v3  ;;  %v2729_v15 = vadd.f32 %v3184_v14, %v4428_v49 }
0x14f7   : > { %2731 = vst [vmem:[%s448_s0 + $0x8] sm:$0xff] %v2729_v15 }
0x14f8   : > { %3678 = shalt.err (!%p3675_p3)
}
0x14f9   : > { %s3679_s20 = scalar_lea.hbm %s4556_s17, 256  ;;  %s3683_s1 = scalar_lea.hbm %s4612_s13, 512 }
0x14fa   : > { %p3680_p4 = scmp.ne.s32.totalorder %s4556_s17, %s3679_s20  ;;  %p3684_p9 = scmp.lt.u32.totalorder %s4556_s17, %s4612_s13 }
0x14fb   : > { %p3685_p10 = scmp.lt.u32.totalorder %s3683_s1, %s3679_s20  ;;  %p3687_p12 = scmp.lt.u32.totalorder %s3679_s20, %s4556_s17 }
0x14fc   : > { %p3681_p7 = pnand %p3680_p4, %p3845_p5 }
0x14fd   : > { %p3686_p11 = por %p3685_p10, %p3684_p9 }
0x14fe   : > { %p3682_p8 = pneg %p3681_p7 }
0x14ff   : > { %p3688_p13 = por %p3687_p12, %p3686_p11 }
0x1501   : > { %p3689_p0 = pnand %p3688_p13, %p3682_p8 }
0x1503   : > { %3692 = shalt.err (!%p3689_p0)
}
0x1504   : > { %s3735_s29 = smov 128   ;;  %s3736_s24 = smov 8  }
0x1505   : > { %3425 = dma.vmem_to_hbm [thread:$0]  (%p3845_p5), %s4550_s23, 256, %s4556_s17, %s4558_s27, %s3735_s29, %s3735_s29, %s3736_s24  }
0x1506 PF: > { %p3431_p1 = scmp.ge.s32.totalorder %s3727_s28, 2  ;;  %s2761_s30 = sand.u32 1, %s3715_s25  }
0x1507   : > { %s2762_s22 = scalar_lea.sflag [#allocation3], %s2761_s30 }
0x1508   : > { %p3428_p2 = pnand %p3431_p1, %p3849_p6 }
0x150a   : > { %3710 = dma.done.wait (!%p3428_p2), %s2762_s22, 256  }
0x150b   : > { %3712 = vsyncadd (!%p3428_p2), %s2762_s22, 4294967040  ;;  %s4630_s20 = sld [smem:[#allocation5_spill]]  ;;  %s4631_s27 = sld [smem:[#allocation6_spill]] }
0x150c   : > { %p23_p3 = scmp.ge.s32.totalorder %s3832_s14, 4   ;;  %s4632_s25 = smov %s3719_s26 }
0x150d   : > { %s4634_s28 = smov %s3832_s14 }
0x150e   :  { %25 = sbr.rel (!%p23_p3) target bundleno = 6 (0x6), region = 118 }
0x1511   : > { %s4633_s26 = smov %s4630_s20 }
0x1515   :  { %2767 = vsyncpa [#allocation3], 1 }
0x1516   :  { %2769 = vsyncpa [#allocation3 + $0x1], 1 }

</bundles_post_ra>
